<compile_context>
chip_gen: v7x
topology: tpu7x:2x2x1
jax: 0.10.0
libtpu: 0.0.40
codegen_flags: <defaults>
</compile_context>

<pallas_src>
import functools

import jax
import jax.numpy as jnp
from jax import lax
from jax.experimental import pallas as pl
from jax.experimental.pallas import tpu as pltpu
import numpy as np


def lstm_kernel(slab_ref, whh_ref, out_ref, *, T, B):
    """Single-layer LSTM recurrence with a fused Linear(H->1) head.

    slab_ref: (4 + T*B, 4*Hpad) packed small operands:
                row 0            : W_ih^T (input->gates), gate-padded to 128 lanes
                row 1            : b_ih + b_hh, gate-padded
                row 2 [:Hpad]    : Linear(H->1) weight, zero-padded to Hpad lanes
                row 3 [0]        : Linear bias
                rows 4.., lane 0 : x, time-major flattened (t0b0, t0b1, t1b0, ...)
    whh_ref:  (Hpad, 4*Hpad)     W_hh^T, gate-column and row zero-padded
    out_ref:  (T*B, 1)           per-step predictions, time-major flattened
    """
    Hpad = whh_ref.shape[0]

    # Loop-invariant loads hoisted out of the unrolled recurrence.
    whh = whh_ref[...]                    # (Hpad, 4*Hpad), VMEM-resident weights
    wih_row = slab_ref[0:1, :]            # (1, 4*Hpad)
    b_row = slab_ref[1:2, :]              # (1, 4*Hpad)
    wlin_row = slab_ref[2:3, 0:Hpad]      # (1, Hpad)
    blin = slab_ref[3:4, 0:1]             # (1, 1)

    h = jnp.zeros((B, Hpad), jnp.float32)
    c = jnp.zeros((B, Hpad), jnp.float32)

    # T is static -> fully unrolled serial recurrence (LLO sees the whole schedule).
    for t in range(T):
        x_t = slab_ref[4 + t * B:4 + (t + 1) * B, 0:1]          # (B, 1)
        # Input projection: input_size == 1, so x_t @ W_ih is a rank-1 broadcast
        # multiply.  Recomputed per step (2 VPU ops) instead of materializing a
        # (T, B, 4*Hpad) intermediate.
        gates = x_t * wih_row + b_row                            # (B, 4*Hpad)
        if t > 0:  # h == 0 at t == 0: skip the matmul on the serial chain.
            gates = gates + jnp.dot(h, whh, preferred_element_type=jnp.float32)
        # PyTorch gate order i, f, g, o; each gate owns its own 128-lane slab so
        # these slices are free lane-aligned vreg selects.
        i_g = jax.nn.sigmoid(gates[:, 0 * Hpad:1 * Hpad])
        f_g = jax.nn.sigmoid(gates[:, 1 * Hpad:2 * Hpad])
        g_g = jnp.tanh(gates[:, 2 * Hpad:3 * Hpad])
        o_g = jax.nn.sigmoid(gates[:, 3 * Hpad:4 * Hpad])
        # Padded lanes: gates == 0 there -> g == 0, so c and h stay exactly 0
        # (relies on zero padding of wih/b/whh/wlin — documented invariant).
        c = f_g * c + i_g * g_g
        h = o_g * jnp.tanh(c)
        # Linear(H -> 1) head: one lane reduce (XLU) + a tiny (B, 1) masked store,
        # both off the h->h dependence chain.  Negligible at B=2; see batch TODO.
        y_t = jnp.sum(h * wlin_row, axis=-1, keepdims=True)      # (B, 1)
        out_ref[t * B:(t + 1) * B, :] = y_t + blin


def _pad_gate_cols(m, H, Hpad):
    """(R, 4H) -> (R, 4*Hpad): each gate's H columns start at a 128-lane offset."""
    parts = [jnp.pad(m[:, k * H:(k + 1) * H], ((0, 0), (0, Hpad - H)))
             for k in range(4)]
    return jnp.concatenate(parts, axis=1)


def lstm_model_forward(x, params):
    """x: (B, T, 1) float32 -> (B, T, 1) float32, matching PyTorch LSTMModel."""
    B, T, _ = x.shape
    H = params["w_hh"].shape[1]                    # w_hh: (4H, H)
    Hpad = ((H + 127) // 128) * 128                # each gate -> its own 128-lane slab

    # Gate-padded weight prep (zero padding is required for padded-lane correctness).
    wih = _pad_gate_cols(params["w_ih"].reshape(1, 4 * H), H, Hpad)        # (1, 4Hpad)
    whh = jnp.pad(_pad_gate_cols(params["w_hh"].T, H, Hpad),
                  ((0, Hpad - H), (0, 0))).astype(jnp.float32)             # (Hpad, 4Hpad)
    b = _pad_gate_cols((params["b_ih"] + params["b_hh"]).reshape(1, 4 * H),
                       H, Hpad)                                            # (1, 4Hpad)
    wlin = params["w_lin"].reshape(1, H)                                   # (1, H)
    blin = params["b_lin"].reshape(())                                     # scalar
    x_flat = jnp.transpose(x, (1, 0, 2)).reshape(T * B).astype(jnp.float32)

    # Pack every tiny operand (weights, biases, inputs) into one slab so the kernel
    # only issues two input DMAs: this slab and whh.
    slab = jnp.zeros((4 + T * B, 4 * Hpad), jnp.float32)
    slab = slab.at[0, :].set(wih[0])
    slab = slab.at[1, :].set(b[0])
    slab = slab.at[2, :H].set(wlin[0])
    slab = slab.at[3, 0].set(blin)
    slab = slab.at[4:, 0].set(x_flat)

    out_flat = pl.pallas_call(
        functools.partial(lstm_kernel, T=T, B=B),
        out_shape=jax.ShapeDtypeStruct((T * B, 1), jnp.float32),
        in_specs=[pl.BlockSpec(memory_space=pltpu.MemorySpace.VMEM)] * 2,
        out_specs=pl.BlockSpec(memory_space=pltpu.MemorySpace.VMEM),
    )(slab, whh)

    # (T*B, 1) time-major -> (B, T, 1) batch-first.
    return jnp.transpose(out_flat.reshape(T, B), (1, 0))[:, :, None]


def init_params(key, hidden_size=50):
    """Deterministic init matching PyTorch shapes (uniform(-1/sqrt(H), 1/sqrt(H)))."""
    H = hidden_size
    k = 1.0 / np.sqrt(H)
    keys = jax.random.split(key, 6)
    u = lambda kk, shape: jax.random.uniform(kk, shape, jnp.float32, -k, k)
    return {
        "w_ih": u(keys[0], (4 * H, 1)),    # LSTM weight_ih_l0
        "w_hh": u(keys[1], (4 * H, H)),    # LSTM weight_hh_l0
        "b_ih": u(keys[2], (4 * H,)),      # LSTM bias_ih_l0
        "b_hh": u(keys[3], (4 * H,)),      # LSTM bias_hh_l0
        "w_lin": u(keys[4], (1, H)),       # Linear weight
        "b_lin": u(keys[5], (1,)),         # Linear bias
    }


def reference_forward(x, params):
    """Pure-JAX reference (lax.scan) for correctness checking."""
    H = params["w_hh"].shape[1]
    B = x.shape[0]
    wih, whh = params["w_ih"].T, params["w_hh"].T
    b = params["b_ih"] + params["b_hh"]

    def step(carry, x_t):
        h, c = carry
        gates = x_t @ wih + h @ whh + b
        i = jax.nn.sigmoid(gates[:, 0 * H:1 * H])
        f = jax.nn.sigmoid(gates[:, 1 * H:2 * H])
        g = jnp.tanh(gates[:, 2 * H:3 * H])
        o = jax.nn.sigmoid(gates[:, 3 * H:4 * H])
        c_new = f * c + i * g
        h_new = o * jnp.tanh(c_new)
        return (h_new, c_new), h_new

    init = (jnp.zeros((B, H), jnp.float32), jnp.zeros((B, H), jnp.float32))
    _, hs = lax.scan(step, init, jnp.transpose(x, (1, 0, 2)))   # (T, B, H)
    y = hs @ params["w_lin"].T + params["b_lin"]                # (T, B, 1)
    return jnp.transpose(y, (1, 0, 2))


if __name__ == "__main__":
    key = jax.random.PRNGKey(0)
    pkey, xkey = jax.random.split(key)

    HIDDEN = 50
    B, T = 2, 8
    params = init_params(pkey, hidden_size=HIDDEN)
    x = jax.random.normal(xkey, (B, T, 1), dtype=jnp.float32)

    y = jax.block_until_ready(lstm_model_forward(x, params))
    y_ref = jax.block_until_ready(reference_forward(x, params))

    assert y.shape == (B, T, 1)
    np.testing.assert_allclose(np.asarray(y), np.asarray(y_ref),
                               rtol=1e-5, atol=1e-5)
    print("KERNEL_OK")
</pallas_src>

<mosaic_0001>
module attributes {stable_mosaic.version = 11 : i64} {
  func.func @lstm_kernel(%arg0: memref<20x512xf32, #tpu.memory_space<vmem>>, %arg1: memref<128x512xf32, #tpu.memory_space<vmem>>, %arg2: memref<16x1xf32, #tpu.memory_space<vmem>>) attributes {dimension_semantics = [], scalar_prefetch = 0 : i64, scratch_operands = 0 : i64, tpu.core_type = #tpu.core_type<tc>} {
    %c0 = arith.constant 0 : index
    %c0_0 = arith.constant 0 : index
    %0 = vector.load %arg1[%c0, %c0_0] : memref<128x512xf32, #tpu.memory_space<vmem>>, vector<128x512xf32>
    %c0_1 = arith.constant 0 : index
    %c0_2 = arith.constant 0 : index
    %1 = vector.load %arg0[%c0_1, %c0_2] : memref<20x512xf32, #tpu.memory_space<vmem>>, vector<1x512xf32>
    %c1 = arith.constant 1 : index
    %c0_3 = arith.constant 0 : index
    %2 = vector.load %arg0[%c1, %c0_3] : memref<20x512xf32, #tpu.memory_space<vmem>>, vector<1x512xf32>
    %c2 = arith.constant 2 : index
    %c0_4 = arith.constant 0 : index
    %3 = vector.load %arg0[%c2, %c0_4] : memref<20x512xf32, #tpu.memory_space<vmem>>, vector<1x128xf32>
    %c3 = arith.constant 3 : index
    %c0_5 = arith.constant 0 : index
    %4 = vector.load %arg0[%c3, %c0_5] : memref<20x512xf32, #tpu.memory_space<vmem>>, vector<1x1xf32>
    %cst = arith.constant 0.000000e+00 : f32
    %5 = vector.broadcast %cst : f32 to vector<2x128xf32>
    %c4 = arith.constant 4 : index
    %c0_6 = arith.constant 0 : index
    %6 = vector.load %arg0[%c4, %c0_6] : memref<20x512xf32, #tpu.memory_space<vmem>>, vector<2x1xf32>
    %7 = vector.broadcast %6 : vector<2x1xf32> to vector<2x512xf32>
    %8 = vector.broadcast %1 : vector<1x512xf32> to vector<2x512xf32>
    %9 = arith.mulf %7, %8 : vector<2x512xf32>
    %10 = vector.broadcast %2 : vector<1x512xf32> to vector<2x512xf32>
    %11 = arith.addf %9, %10 : vector<2x512xf32>
    %12 = vector.extract_strided_slice %11 {offsets = [0, 0], sizes = [2, 128], strides = [1, 1]} : vector<2x512xf32> to vector<2x128xf32>
    %13 = arith.negf %12 : vector<2x128xf32>
    %14 = math.exp %13 : vector<2x128xf32>
    %cst_7 = arith.constant 1.000000e+00 : f32
    %15 = vector.broadcast %cst_7 : f32 to vector<2x128xf32>
    %16 = arith.addf %15, %14 : vector<2x128xf32>
    %17 = arith.divf %15, %16 : vector<2x128xf32>
    %18 = vector.extract_strided_slice %11 {offsets = [0, 128], sizes = [2, 128], strides = [1, 1]} : vector<2x512xf32> to vector<2x128xf32>
    %19 = arith.negf %18 : vector<2x128xf32>
    %20 = math.exp %19 : vector<2x128xf32>
    %cst_8 = arith.constant 1.000000e+00 : f32
    %21 = vector.broadcast %cst_8 : f32 to vector<2x128xf32>
    %22 = arith.addf %21, %20 : vector<2x128xf32>
    %23 = arith.divf %21, %22 : vector<2x128xf32>
    %24 = vector.extract_strided_slice %11 {offsets = [0, 256], sizes = [2, 128], strides = [1, 1]} : vector<2x512xf32> to vector<2x128xf32>
    %25 = math.tanh %24 : vector<2x128xf32>
    %26 = vector.extract_strided_slice %11 {offsets = [0, 384], sizes = [2, 128], strides = [1, 1]} : vector<2x512xf32> to vector<2x128xf32>
    %27 = arith.negf %26 : vector<2x128xf32>
    %28 = math.exp %27 : vector<2x128xf32>
    %cst_9 = arith.constant 1.000000e+00 : f32
    %29 = vector.broadcast %cst_9 : f32 to vector<2x128xf32>
    %30 = arith.addf %29, %28 : vector<2x128xf32>
    %31 = arith.divf %29, %30 : vector<2x128xf32>
    %32 = arith.mulf %23, %5 : vector<2x128xf32>
    %33 = arith.mulf %17, %25 : vector<2x128xf32>
    %34 = arith.addf %32, %33 : vector<2x128xf32>
    %35 = math.tanh %34 : vector<2x128xf32>
    %36 = arith.mulf %31, %35 : vector<2x128xf32>
    %37 = vector.broadcast %3 : vector<1x128xf32> to vector<2x128xf32>
    %38 = arith.mulf %36, %37 : vector<2x128xf32>
    %cst_10 = arith.constant dense<0.000000e+00> : vector<2xf32>
    %39 = vector.multi_reduction <add>, %38, %cst_10 [1] : vector<2x128xf32> to vector<2xf32>
    %40 = vector.shape_cast %39 : vector<2xf32> to vector<2x1xf32>
    %41 = vector.broadcast %4 : vector<1x1xf32> to vector<2x1xf32>
    %42 = arith.addf %40, %41 : vector<2x1xf32>
    %c0_11 = arith.constant 0 : index
    %c0_12 = arith.constant 0 : index
    %43 = vector.load %arg2[%c0_11, %c0_12] : memref<16x1xf32, #tpu.memory_space<vmem>>, vector<2x1xf32>
    tpu.vector_store %arg2[%c0_11, %c0_12], %42 {strides = array<i32>} : memref<16x1xf32, #tpu.memory_space<vmem>>, vector<2x1xf32>,
    %c6 = arith.constant 6 : index
    %c0_13 = arith.constant 0 : index
    %44 = vector.load %arg0[%c6, %c0_13] : memref<20x512xf32, #tpu.memory_space<vmem>>, vector<2x1xf32>
    %45 = vector.broadcast %44 : vector<2x1xf32> to vector<2x512xf32>
    %46 = vector.broadcast %1 : vector<1x512xf32> to vector<2x512xf32>
    %47 = arith.mulf %45, %46 : vector<2x512xf32>
    %48 = vector.broadcast %2 : vector<1x512xf32> to vector<2x512xf32>
    %49 = arith.addf %47, %48 : vector<2x512xf32>
    %cst_14 = arith.constant dense<0.000000e+00> : vector<2x512xf32>
    %50 = tpu.matmul %36, %0, %cst_14 {dimension_numbers = #tpu.dot_dimension_numbers<[1], [0], [0], [1], [0, 0, 1, 1], [], []>} : vector<2x128xf32>, vector<128x512xf32>, vector<2x512xf32> -> vector<2x512xf32>
    %51 = arith.addf %49, %50 : vector<2x512xf32>
    %52 = vector.extract_strided_slice %51 {offsets = [0, 0], sizes = [2, 128], strides = [1, 1]} : vector<2x512xf32> to vector<2x128xf32>
    %53 = arith.negf %52 : vector<2x128xf32>
    %54 = math.exp %53 : vector<2x128xf32>
    %cst_15 = arith.constant 1.000000e+00 : f32
    %55 = vector.broadcast %cst_15 : f32 to vector<2x128xf32>
    %56 = arith.addf %55, %54 : vector<2x128xf32>
    %57 = arith.divf %55, %56 : vector<2x128xf32>
    %58 = vector.extract_strided_slice %51 {offsets = [0, 128], sizes = [2, 128], strides = [1, 1]} : vector<2x512xf32> to vector<2x128xf32>
    %59 = arith.negf %58 : vector<2x128xf32>
    %60 = math.exp %59 : vector<2x128xf32>
    %cst_16 = arith.constant 1.000000e+00 : f32
    %61 = vector.broadcast %cst_16 : f32 to vector<2x128xf32>
    %62 = arith.addf %61, %60 : vector<2x128xf32>
    %63 = arith.divf %61, %62 : vector<2x128xf32>
    %64 = vector.extract_strided_slice %51 {offsets = [0, 256], sizes = [2, 128], strides = [1, 1]} : vector<2x512xf32> to vector<2x128xf32>
    %65 = math.tanh %64 : vector<2x128xf32>
    %66 = vector.extract_strided_slice %51 {offsets = [0, 384], sizes = [2, 128], strides = [1, 1]} : vector<2x512xf32> to vector<2x128xf32>
    %67 = arith.negf %66 : vector<2x128xf32>
    %68 = math.exp %67 : vector<2x128xf32>
    %cst_17 = arith.constant 1.000000e+00 : f32
    %69 = vector.broadcast %cst_17 : f32 to vector<2x128xf32>
    %70 = arith.addf %69, %68 : vector<2x128xf32>
    %71 = arith.divf %69, %70 : vector<2x128xf32>
    %72 = arith.mulf %63, %34 : vector<2x128xf32>
    %73 = arith.mulf %57, %65 : vector<2x128xf32>
    %74 = arith.addf %72, %73 : vector<2x128xf32>
    %75 = math.tanh %74 : vector<2x128xf32>
    %76 = arith.mulf %71, %75 : vector<2x128xf32>
    %77 = vector.broadcast %3 : vector<1x128xf32> to vector<2x128xf32>
    %78 = arith.mulf %76, %77 : vector<2x128xf32>
    %cst_18 = arith.constant dense<0.000000e+00> : vector<2xf32>
    %79 = vector.multi_reduction <add>, %78, %cst_18 [1] : vector<2x128xf32> to vector<2xf32>
    %80 = vector.shape_cast %79 : vector<2xf32> to vector<2x1xf32>
    %81 = vector.broadcast %4 : vector<1x1xf32> to vector<2x1xf32>
    %82 = arith.addf %80, %81 : vector<2x1xf32>
    %c2_19 = arith.constant 2 : index
    %c0_20 = arith.constant 0 : index
    %83 = vector.load %arg2[%c2_19, %c0_20] : memref<16x1xf32, #tpu.memory_space<vmem>>, vector<2x1xf32>
    tpu.vector_store %arg2[%c2_19, %c0_20], %82 {strides = array<i32>} : memref<16x1xf32, #tpu.memory_space<vmem>>, vector<2x1xf32>,
    %c8 = arith.constant 8 : index
    %c0_21 = arith.constant 0 : index
    %84 = vector.load %arg0[%c8, %c0_21] : memref<20x512xf32, #tpu.memory_space<vmem>>, vector<2x1xf32>
    %85 = vector.broadcast %84 : vector<2x1xf32> to vector<2x512xf32>
    %86 = vector.broadcast %1 : vector<1x512xf32> to vector<2x512xf32>
    %87 = arith.mulf %85, %86 : vector<2x512xf32>
    %88 = vector.broadcast %2 : vector<1x512xf32> to vector<2x512xf32>
    %89 = arith.addf %87, %88 : vector<2x512xf32>
    %cst_22 = arith.constant dense<0.000000e+00> : vector<2x512xf32>
    %90 = tpu.matmul %76, %0, %cst_22 {dimension_numbers = #tpu.dot_dimension_numbers<[1], [0], [0], [1], [0, 0, 1, 1], [], []>} : vector<2x128xf32>, vector<128x512xf32>, vector<2x512xf32> -> vector<2x512xf32>
    %91 = arith.addf %89, %90 : vector<2x512xf32>
    %92 = vector.extract_strided_slice %91 {offsets = [0, 0], sizes = [2, 128], strides = [1, 1]} : vector<2x512xf32> to vector<2x128xf32>
    %93 = arith.negf %92 : vector<2x128xf32>
    %94 = math.exp %93 : vector<2x128xf32>
    %cst_23 = arith.constant 1.000000e+00 : f32
    %95 = vector.broadcast %cst_23 : f32 to vector<2x128xf32>
    %96 = arith.addf %95, %94 : vector<2x128xf32>
    %97 = arith.divf %95, %96 : vector<2x128xf32>
    %98 = vector.extract_strided_slice %91 {offsets = [0, 128], sizes = [2, 128], strides = [1, 1]} : vector<2x512xf32> to vector<2x128xf32>
    %99 = arith.negf %98 : vector<2x128xf32>
    %100 = math.exp %99 : vector<2x128xf32>
    %cst_24 = arith.constant 1.000000e+00 : f32
    %101 = vector.broadcast %cst_24 : f32 to vector<2x128xf32>
    %102 = arith.addf %101, %100 : vector<2x128xf32>
    %103 = arith.divf %101, %102 : vector<2x128xf32>
    %104 = vector.extract_strided_slice %91 {offsets = [0, 256], sizes = [2, 128], strides = [1, 1]} : vector<2x512xf32> to vector<2x128xf32>
    %105 = math.tanh %104 : vector<2x128xf32>
    %106 = vector.extract_strided_slice %91 {offsets = [0, 384], sizes = [2, 128], strides = [1, 1]} : vector<2x512xf32> to vector<2x128xf32>
    %107 = arith.negf %106 : vector<2x128xf32>
    %108 = math.exp %107 : vector<2x128xf32>
    %cst_25 = arith.constant 1.000000e+00 : f32
    %109 = vector.broadcast %cst_25 : f32 to vector<2x128xf32>
    %110 = arith.addf %109, %108 : vector<2x128xf32>
    %111 = arith.divf %109, %110 : vector<2x128xf32>
    %112 = arith.mulf %103, %74 : vector<2x128xf32>
    %113 = arith.mulf %97, %105 : vector<2x128xf32>
    %114 = arith.addf %112, %113 : vector<2x128xf32>
    %115 = math.tanh %114 : vector<2x128xf32>
    %116 = arith.mulf %111, %115 : vector<2x128xf32>
    %117 = vector.broadcast %3 : vector<1x128xf32> to vector<2x128xf32>
    %118 = arith.mulf %116, %117 : vector<2x128xf32>
    %cst_26 = arith.constant dense<0.000000e+00> : vector<2xf32>
    %119 = vector.multi_reduction <add>, %118, %cst_26 [1] : vector<2x128xf32> to vector<2xf32>
    %120 = vector.shape_cast %119 : vector<2xf32> to vector<2x1xf32>
    %121 = vector.broadcast %4 : vector<1x1xf32> to vector<2x1xf32>
    %122 = arith.addf %120, %121 : vector<2x1xf32>
    %c4_27 = arith.constant 4 : index
    %c0_28 = arith.constant 0 : index
    %123 = vector.load %arg2[%c4_27, %c0_28] : memref<16x1xf32, #tpu.memory_space<vmem>>, vector<2x1xf32>
    tpu.vector_store %arg2[%c4_27, %c0_28], %122 {strides = array<i32>} : memref<16x1xf32, #tpu.memory_space<vmem>>, vector<2x1xf32>,
    %c10 = arith.constant 10 : index
    %c0_29 = arith.constant 0 : index
    %124 = vector.load %arg0[%c10, %c0_29] : memref<20x512xf32, #tpu.memory_space<vmem>>, vector<2x1xf32>
    %125 = vector.broadcast %124 : vector<2x1xf32> to vector<2x512xf32>
    %126 = vector.broadcast %1 : vector<1x512xf32> to vector<2x512xf32>
    %127 = arith.mulf %125, %126 : vector<2x512xf32>
    %128 = vector.broadcast %2 : vector<1x512xf32> to vector<2x512xf32>
    %129 = arith.addf %127, %128 : vector<2x512xf32>
    %cst_30 = arith.constant dense<0.000000e+00> : vector<2x512xf32>
    %130 = tpu.matmul %116, %0, %cst_30 {dimension_numbers = #tpu.dot_dimension_numbers<[1], [0], [0], [1], [0, 0, 1, 1], [], []>} : vector<2x128xf32>, vector<128x512xf32>, vector<2x512xf32> -> vector<2x512xf32>
    %131 = arith.addf %129, %130 : vector<2x512xf32>
    %132 = vector.extract_strided_slice %131 {offsets = [0, 0], sizes = [2, 128], strides = [1, 1]} : vector<2x512xf32> to vector<2x128xf32>
    %133 = arith.negf %132 : vector<2x128xf32>
    %134 = math.exp %133 : vector<2x128xf32>
    %cst_31 = arith.constant 1.000000e+00 : f32
    %135 = vector.broadcast %cst_31 : f32 to vector<2x128xf32>
    %136 = arith.addf %135, %134 : vector<2x128xf32>
    %137 = arith.divf %135, %136 : vector<2x128xf32>
    %138 = vector.extract_strided_slice %131 {offsets = [0, 128], sizes = [2, 128], strides = [1, 1]} : vector<2x512xf32> to vector<2x128xf32>
    %139 = arith.negf %138 : vector<2x128xf32>
    %140 = math.exp %139 : vector<2x128xf32>
    %cst_32 = arith.constant 1.000000e+00 : f32
    %141 = vector.broadcast %cst_32 : f32 to vector<2x128xf32>
    %142 = arith.addf %141, %140 : vector<2x128xf32>
    %143 = arith.divf %141, %142 : vector<2x128xf32>
    %144 = vector.extract_strided_slice %131 {offsets = [0, 256], sizes = [2, 128], strides = [1, 1]} : vector<2x512xf32> to vector<2x128xf32>
    %145 = math.tanh %144 : vector<2x128xf32>
    %146 = vector.extract_strided_slice %131 {offsets = [0, 384], sizes = [2, 128], strides = [1, 1]} : vector<2x512xf32> to vector<2x128xf32>
    %147 = arith.negf %146 : vector<2x128xf32>
    %148 = math.exp %147 : vector<2x128xf32>
    %cst_33 = arith.constant 1.000000e+00 : f32
    %149 = vector.broadcast %cst_33 : f32 to vector<2x128xf32>
    %150 = arith.addf %149, %148 : vector<2x128xf32>
    %151 = arith.divf %149, %150 : vector<2x128xf32>
    %152 = arith.mulf %143, %114 : vector<2x128xf32>
    %153 = arith.mulf %137, %145 : vector<2x128xf32>
    %154 = arith.addf %152, %153 : vector<2x128xf32>
    %155 = math.tanh %154 : vector<2x128xf32>
    %156 = arith.mulf %151, %155 : vector<2x128xf32>
    %157 = vector.broadcast %3 : vector<1x128xf32> to vector<2x128xf32>
    %158 = arith.mulf %156, %157 : vector<2x128xf32>
    %cst_34 = arith.constant dense<0.000000e+00> : vector<2xf32>
    %159 = vector.multi_reduction <add>, %158, %cst_34 [1] : vector<2x128xf32> to vector<2xf32>
    %160 = vector.shape_cast %159 : vector<2xf32> to vector<2x1xf32>
    %161 = vector.broadcast %4 : vector<1x1xf32> to vector<2x1xf32>
    %162 = arith.addf %160, %161 : vector<2x1xf32>
    %c6_35 = arith.constant 6 : index
    %c0_36 = arith.constant 0 : index
    %163 = vector.load %arg2[%c6_35, %c0_36] : memref<16x1xf32, #tpu.memory_space<vmem>>, vector<2x1xf32>
    tpu.vector_store %arg2[%c6_35, %c0_36], %162 {strides = array<i32>} : memref<16x1xf32, #tpu.memory_space<vmem>>, vector<2x1xf32>,
    %c12 = arith.constant 12 : index
    %c0_37 = arith.constant 0 : index
    %164 = vector.load %arg0[%c12, %c0_37] : memref<20x512xf32, #tpu.memory_space<vmem>>, vector<2x1xf32>
    %165 = vector.broadcast %164 : vector<2x1xf32> to vector<2x512xf32>
    %166 = vector.broadcast %1 : vector<1x512xf32> to vector<2x512xf32>
    %167 = arith.mulf %165, %166 : vector<2x512xf32>
    %168 = vector.broadcast %2 : vector<1x512xf32> to vector<2x512xf32>
    %169 = arith.addf %167, %168 : vector<2x512xf32>
    %cst_38 = arith.constant dense<0.000000e+00> : vector<2x512xf32>
    %170 = tpu.matmul %156, %0, %cst_38 {dimension_numbers = #tpu.dot_dimension_numbers<[1], [0], [0], [1], [0, 0, 1, 1], [], []>} : vector<2x128xf32>, vector<128x512xf32>, vector<2x512xf32> -> vector<2x512xf32>
    %171 = arith.addf %169, %170 : vector<2x512xf32>
    %172 = vector.extract_strided_slice %171 {offsets = [0, 0], sizes = [2, 128], strides = [1, 1]} : vector<2x512xf32> to vector<2x128xf32>
    %173 = arith.negf %172 : vector<2x128xf32>
    %174 = math.exp %173 : vector<2x128xf32>
    %cst_39 = arith.constant 1.000000e+00 : f32
    %175 = vector.broadcast %cst_39 : f32 to vector<2x128xf32>
    %176 = arith.addf %175, %174 : vector<2x128xf32>
    %177 = arith.divf %175, %176 : vector<2x128xf32>
    %178 = vector.extract_strided_slice %171 {offsets = [0, 128], sizes = [2, 128], strides = [1, 1]} : vector<2x512xf32> to vector<2x128xf32>
    %179 = arith.negf %178 : vector<2x128xf32>
    %180 = math.exp %179 : vector<2x128xf32>
    %cst_40 = arith.constant 1.000000e+00 : f32
    %181 = vector.broadcast %cst_40 : f32 to vector<2x128xf32>
    %182 = arith.addf %181, %180 : vector<2x128xf32>
    %183 = arith.divf %181, %182 : vector<2x128xf32>
    %184 = vector.extract_strided_slice %171 {offsets = [0, 256], sizes = [2, 128], strides = [1, 1]} : vector<2x512xf32> to vector<2x128xf32>
    %185 = math.tanh %184 : vector<2x128xf32>
    %186 = vector.extract_strided_slice %171 {offsets = [0, 384], sizes = [2, 128], strides = [1, 1]} : vector<2x512xf32> to vector<2x128xf32>
    %187 = arith.negf %186 : vector<2x128xf32>
    %188 = math.exp %187 : vector<2x128xf32>
    %cst_41 = arith.constant 1.000000e+00 : f32
    %189 = vector.broadcast %cst_41 : f32 to vector<2x128xf32>
    %190 = arith.addf %189, %188 : vector<2x128xf32>
    %191 = arith.divf %189, %190 : vector<2x128xf32>
    %192 = arith.mulf %183, %154 : vector<2x128xf32>
    %193 = arith.mulf %177, %185 : vector<2x128xf32>
    %194 = arith.addf %192, %193 : vector<2x128xf32>
    %195 = math.tanh %194 : vector<2x128xf32>
    %196 = arith.mulf %191, %195 : vector<2x128xf32>
    %197 = vector.broadcast %3 : vector<1x128xf32> to vector<2x128xf32>
    %198 = arith.mulf %196, %197 : vector<2x128xf32>
    %cst_42 = arith.constant dense<0.000000e+00> : vector<2xf32>
    %199 = vector.multi_reduction <add>, %198, %cst_42 [1] : vector<2x128xf32> to vector<2xf32>
    %200 = vector.shape_cast %199 : vector<2xf32> to vector<2x1xf32>
    %201 = vector.broadcast %4 : vector<1x1xf32> to vector<2x1xf32>
    %202 = arith.addf %200, %201 : vector<2x1xf32>
    %c8_43 = arith.constant 8 : index
    %c0_44 = arith.constant 0 : index
    %203 = vector.load %arg2[%c8_43, %c0_44] : memref<16x1xf32, #tpu.memory_space<vmem>>, vector<2x1xf32>
    tpu.vector_store %arg2[%c8_43, %c0_44], %202 {strides = array<i32>} : memref<16x1xf32, #tpu.memory_space<vmem>>, vector<2x1xf32>,
    %c14 = arith.constant 14 : index
    %c0_45 = arith.constant 0 : index
    %204 = vector.load %arg0[%c14, %c0_45] : memref<20x512xf32, #tpu.memory_space<vmem>>, vector<2x1xf32>
    %205 = vector.broadcast %204 : vector<2x1xf32> to vector<2x512xf32>
    %206 = vector.broadcast %1 : vector<1x512xf32> to vector<2x512xf32>
    %207 = arith.mulf %205, %206 : vector<2x512xf32>
    %208 = vector.broadcast %2 : vector<1x512xf32> to vector<2x512xf32>
    %209 = arith.addf %207, %208 : vector<2x512xf32>
    %cst_46 = arith.constant dense<0.000000e+00> : vector<2x512xf32>
    %210 = tpu.matmul %196, %0, %cst_46 {dimension_numbers = #tpu.dot_dimension_numbers<[1], [0], [0], [1], [0, 0, 1, 1], [], []>} : vector<2x128xf32>, vector<128x512xf32>, vector<2x512xf32> -> vector<2x512xf32>
    %211 = arith.addf %209, %210 : vector<2x512xf32>
    %212 = vector.extract_strided_slice %211 {offsets = [0, 0], sizes = [2, 128], strides = [1, 1]} : vector<2x512xf32> to vector<2x128xf32>
    %213 = arith.negf %212 : vector<2x128xf32>
    %214 = math.exp %213 : vector<2x128xf32>
    %cst_47 = arith.constant 1.000000e+00 : f32
    %215 = vector.broadcast %cst_47 : f32 to vector<2x128xf32>
    %216 = arith.addf %215, %214 : vector<2x128xf32>
    %217 = arith.divf %215, %216 : vector<2x128xf32>
    %218 = vector.extract_strided_slice %211 {offsets = [0, 128], sizes = [2, 128], strides = [1, 1]} : vector<2x512xf32> to vector<2x128xf32>
    %219 = arith.negf %218 : vector<2x128xf32>
    %220 = math.exp %219 : vector<2x128xf32>
    %cst_48 = arith.constant 1.000000e+00 : f32
    %221 = vector.broadcast %cst_48 : f32 to vector<2x128xf32>
    %222 = arith.addf %221, %220 : vector<2x128xf32>
    %223 = arith.divf %221, %222 : vector<2x128xf32>
    %224 = vector.extract_strided_slice %211 {offsets = [0, 256], sizes = [2, 128], strides = [1, 1]} : vector<2x512xf32> to vector<2x128xf32>
    %225 = math.tanh %224 : vector<2x128xf32>
    %226 = vector.extract_strided_slice %211 {offsets = [0, 384], sizes = [2, 128], strides = [1, 1]} : vector<2x512xf32> to vector<2x128xf32>
    %227 = arith.negf %226 : vector<2x128xf32>
    %228 = math.exp %227 : vector<2x128xf32>
    %cst_49 = arith.constant 1.000000e+00 : f32
    %229 = vector.broadcast %cst_49 : f32 to vector<2x128xf32>
    %230 = arith.addf %229, %228 : vector<2x128xf32>
    %231 = arith.divf %229, %230 : vector<2x128xf32>
    %232 = arith.mulf %223, %194 : vector<2x128xf32>
    %233 = arith.mulf %217, %225 : vector<2x128xf32>
    %234 = arith.addf %232, %233 : vector<2x128xf32>
    %235 = math.tanh %234 : vector<2x128xf32>
    %236 = arith.mulf %231, %235 : vector<2x128xf32>
    %237 = vector.broadcast %3 : vector<1x128xf32> to vector<2x128xf32>
    %238 = arith.mulf %236, %237 : vector<2x128xf32>
    %cst_50 = arith.constant dense<0.000000e+00> : vector<2xf32>
    %239 = vector.multi_reduction <add>, %238, %cst_50 [1] : vector<2x128xf32> to vector<2xf32>
    %240 = vector.shape_cast %239 : vector<2xf32> to vector<2x1xf32>
    %241 = vector.broadcast %4 : vector<1x1xf32> to vector<2x1xf32>
    %242 = arith.addf %240, %241 : vector<2x1xf32>
    %c10_51 = arith.constant 10 : index
    %c0_52 = arith.constant 0 : index
    %243 = vector.load %arg2[%c10_51, %c0_52] : memref<16x1xf32, #tpu.memory_space<vmem>>, vector<2x1xf32>
    tpu.vector_store %arg2[%c10_51, %c0_52], %242 {strides = array<i32>} : memref<16x1xf32, #tpu.memory_space<vmem>>, vector<2x1xf32>,
    %c16 = arith.constant 16 : index
    %c0_53 = arith.constant 0 : index
    %244 = vector.load %arg0[%c16, %c0_53] : memref<20x512xf32, #tpu.memory_space<vmem>>, vector<2x1xf32>
    %245 = vector.broadcast %244 : vector<2x1xf32> to vector<2x512xf32>
    %246 = vector.broadcast %1 : vector<1x512xf32> to vector<2x512xf32>
    %247 = arith.mulf %245, %246 : vector<2x512xf32>
    %248 = vector.broadcast %2 : vector<1x512xf32> to vector<2x512xf32>
    %249 = arith.addf %247, %248 : vector<2x512xf32>
    %cst_54 = arith.constant dense<0.000000e+00> : vector<2x512xf32>
    %250 = tpu.matmul %236, %0, %cst_54 {dimension_numbers = #tpu.dot_dimension_numbers<[1], [0], [0], [1], [0, 0, 1, 1], [], []>} : vector<2x128xf32>, vector<128x512xf32>, vector<2x512xf32> -> vector<2x512xf32>
    %251 = arith.addf %249, %250 : vector<2x512xf32>
    %252 = vector.extract_strided_slice %251 {offsets = [0, 0], sizes = [2, 128], strides = [1, 1]} : vector<2x512xf32> to vector<2x128xf32>
    %253 = arith.negf %252 : vector<2x128xf32>
    %254 = math.exp %253 : vector<2x128xf32>
    %cst_55 = arith.constant 1.000000e+00 : f32
    %255 = vector.broadcast %cst_55 : f32 to vector<2x128xf32>
    %256 = arith.addf %255, %254 : vector<2x128xf32>
    %257 = arith.divf %255, %256 : vector<2x128xf32>
    %258 = vector.extract_strided_slice %251 {offsets = [0, 128], sizes = [2, 128], strides = [1, 1]} : vector<2x512xf32> to vector<2x128xf32>
    %259 = arith.negf %258 : vector<2x128xf32>
    %260 = math.exp %259 : vector<2x128xf32>
    %cst_56 = arith.constant 1.000000e+00 : f32
    %261 = vector.broadcast %cst_56 : f32 to vector<2x128xf32>
    %262 = arith.addf %261, %260 : vector<2x128xf32>
    %263 = arith.divf %261, %262 : vector<2x128xf32>
    %264 = vector.extract_strided_slice %251 {offsets = [0, 256], sizes = [2, 128], strides = [1, 1]} : vector<2x512xf32> to vector<2x128xf32>
    %265 = math.tanh %264 : vector<2x128xf32>
    %266 = vector.extract_strided_slice %251 {offsets = [0, 384], sizes = [2, 128], strides = [1, 1]} : vector<2x512xf32> to vector<2x128xf32>
    %267 = arith.negf %266 : vector<2x128xf32>
    %268 = math.exp %267 : vector<2x128xf32>
    %cst_57 = arith.constant 1.000000e+00 : f32
    %269 = vector.broadcast %cst_57 : f32 to vector<2x128xf32>
    %270 = arith.addf %269, %268 : vector<2x128xf32>
    %271 = arith.divf %269, %270 : vector<2x128xf32>
    %272 = arith.mulf %263, %234 : vector<2x128xf32>
    %273 = arith.mulf %257, %265 : vector<2x128xf32>
    %274 = arith.addf %272, %273 : vector<2x128xf32>
    %275 = math.tanh %274 : vector<2x128xf32>
    %276 = arith.mulf %271, %275 : vector<2x128xf32>
    %277 = vector.broadcast %3 : vector<1x128xf32> to vector<2x128xf32>
    %278 = arith.mulf %276, %277 : vector<2x128xf32>
    %cst_58 = arith.constant dense<0.000000e+00> : vector<2xf32>
    %279 = vector.multi_reduction <add>, %278, %cst_58 [1] : vector<2x128xf32> to vector<2xf32>
    %280 = vector.shape_cast %279 : vector<2xf32> to vector<2x1xf32>
    %281 = vector.broadcast %4 : vector<1x1xf32> to vector<2x1xf32>
    %282 = arith.addf %280, %281 : vector<2x1xf32>
    %c12_59 = arith.constant 12 : index
    %c0_60 = arith.constant 0 : index
    %283 = vector.load %arg2[%c12_59, %c0_60] : memref<16x1xf32, #tpu.memory_space<vmem>>, vector<2x1xf32>
    tpu.vector_store %arg2[%c12_59, %c0_60], %282 {strides = array<i32>} : memref<16x1xf32, #tpu.memory_space<vmem>>, vector<2x1xf32>,
    %c18 = arith.constant 18 : index
    %c0_61 = arith.constant 0 : index
    %284 = vector.load %arg0[%c18, %c0_61] : memref<20x512xf32, #tpu.memory_space<vmem>>, vector<2x1xf32>
    %285 = vector.broadcast %284 : vector<2x1xf32> to vector<2x512xf32>
    %286 = vector.broadcast %1 : vector<1x512xf32> to vector<2x512xf32>
    %287 = arith.mulf %285, %286 : vector<2x512xf32>
    %288 = vector.broadcast %2 : vector<1x512xf32> to vector<2x512xf32>
    %289 = arith.addf %287, %288 : vector<2x512xf32>
    %cst_62 = arith.constant dense<0.000000e+00> : vector<2x512xf32>
    %290 = tpu.matmul %276, %0, %cst_62 {dimension_numbers = #tpu.dot_dimension_numbers<[1], [0], [0], [1], [0, 0, 1, 1], [], []>} : vector<2x128xf32>, vector<128x512xf32>, vector<2x512xf32> -> vector<2x512xf32>
    %291 = arith.addf %289, %290 : vector<2x512xf32>
    %292 = vector.extract_strided_slice %291 {offsets = [0, 0], sizes = [2, 128], strides = [1, 1]} : vector<2x512xf32> to vector<2x128xf32>
    %293 = arith.negf %292 : vector<2x128xf32>
    %294 = math.exp %293 : vector<2x128xf32>
    %cst_63 = arith.constant 1.000000e+00 : f32
    %295 = vector.broadcast %cst_63 : f32 to vector<2x128xf32>
    %296 = arith.addf %295, %294 : vector<2x128xf32>
    %297 = arith.divf %295, %296 : vector<2x128xf32>
    %298 = vector.extract_strided_slice %291 {offsets = [0, 128], sizes = [2, 128], strides = [1, 1]} : vector<2x512xf32> to vector<2x128xf32>
    %299 = arith.negf %298 : vector<2x128xf32>
    %300 = math.exp %299 : vector<2x128xf32>
    %cst_64 = arith.constant 1.000000e+00 : f32
    %301 = vector.broadcast %cst_64 : f32 to vector<2x128xf32>
    %302 = arith.addf %301, %300 : vector<2x128xf32>
    %303 = arith.divf %301, %302 : vector<2x128xf32>
    %304 = vector.extract_strided_slice %291 {offsets = [0, 256], sizes = [2, 128], strides = [1, 1]} : vector<2x512xf32> to vector<2x128xf32>
    %305 = math.tanh %304 : vector<2x128xf32>
    %306 = vector.extract_strided_slice %291 {offsets = [0, 384], sizes = [2, 128], strides = [1, 1]} : vector<2x512xf32> to vector<2x128xf32>
    %307 = arith.negf %306 : vector<2x128xf32>
    %308 = math.exp %307 : vector<2x128xf32>
    %cst_65 = arith.constant 1.000000e+00 : f32
    %309 = vector.broadcast %cst_65 : f32 to vector<2x128xf32>
    %310 = arith.addf %309, %308 : vector<2x128xf32>
    %311 = arith.divf %309, %310 : vector<2x128xf32>
    %312 = arith.mulf %303, %274 : vector<2x128xf32>
    %313 = arith.mulf %297, %305 : vector<2x128xf32>
    %314 = arith.addf %312, %313 : vector<2x128xf32>
    %315 = math.tanh %314 : vector<2x128xf32>
    %316 = arith.mulf %311, %315 : vector<2x128xf32>
    %317 = vector.broadcast %3 : vector<1x128xf32> to vector<2x128xf32>
    %318 = arith.mulf %316, %317 : vector<2x128xf32>
    %cst_66 = arith.constant dense<0.000000e+00> : vector<2xf32>
    %319 = vector.multi_reduction <add>, %318, %cst_66 [1] : vector<2x128xf32> to vector<2xf32>
    %320 = vector.shape_cast %319 : vector<2xf32> to vector<2x1xf32>
    %321 = vector.broadcast %4 : vector<1x1xf32> to vector<2x1xf32>
    %322 = arith.addf %320, %321 : vector<2x1xf32>
    %c14_67 = arith.constant 14 : index
    %c0_68 = arith.constant 0 : index
    %323 = vector.load %arg2[%c14_67, %c0_68] : memref<16x1xf32, #tpu.memory_space<vmem>>, vector<2x1xf32>
    tpu.vector_store %arg2[%c14_67, %c0_68], %322 {strides = array<i32>} : memref<16x1xf32, #tpu.memory_space<vmem>>, vector<2x1xf32>,
    return
  }
}

</mosaic_0001>

<bundles_post_ra>
// kernel: tpu_custom_call.1
= control target key start
LH: loop header
LB: loop body
LE: loop exit
PB: predicated region body
PF: predicated region fallthrough
CT: control target
= control target key end

     0   :  { %7 = vsyncpa [#allocation3], 0  ;;  %s2830_s0 = inlined_call_operand.hbm [shape: f32[20,512], index: 0, kind: input, shape index: {}]   ;;  %s2831_s1 = inlined_call_operand.hbm [shape: f32[128,512], index: 1, kind: input, shape index: {}]   ;;  %s2832_s2 = inlined_call_operand.vmem [shape: f32[16,1], index: 2, kind: output, shape index: {}]  }
   0x1   :  { %8 = vsyncpa [#allocation5], 0  ;;  %s2292_s9 = smov [#allocation2]   ;;  %s2244_s13 = scalar_lea.hbm %s2830_s0, 1536 }
   0x2   :  { %s14_s10 = sshll.u32 %s2292_s9, 4  ;;  %p2245_p0 = scmp.ne.s32.totalorder %s2830_s0, %s2244_s13  ;;  %s15_s10 = int_to_ptr.vmem [resolvable:$true] %s14_s10 }
   0x3   :  { %p2248_p1 = scmp.lt.u32.totalorder %s2244_s13, %s2830_s0 }
   0x5   :  { %p2250_p2 = pnand %p2248_p1, %p2245_p0 }
   0x7   :  { %2253 = shalt.err (!%p2250_p2)
}
   0x8   :  { %s2254_s18 = scalar_lea.vmem %s15_s10, 1536  ;;  %p2259_p4 = scmp.lt.s32.totalorder %s15_s10, %s15_s10 }
   0x9   :  { %p2255_p3 = scmp.ne.s32.totalorder %s15_s10, %s2254_s18  ;;  %p2260_p5 = scmp.lt.s32.totalorder %s2254_s18, %s2254_s18 }
   0xb   :  { %p2261_p6 = por %p2260_p5, %p2259_p4 }
   0xd   :  { %p2262_p7 = pnand %p2261_p6, %p2255_p3 }
   0xf   :  { %2265 = shalt.err (!%p2262_p7)
}
  0x10   :  { %s2293_s19 = smov 512   ;;  %s2294_s20 = smov 32  }
  0x11   :  { %20 = dma.hbm_to_vmem [thread:$0]  %s2830_s0, 1536, %s15_s10, [#allocation3], %s2293_s19, %s2293_s19, %s2294_s20  }
  0x12   :  { %s2295_s23 = smov [#allocation4]   ;;  %s2266_s27 = scalar_lea.hbm %s2831_s1, 8192 }
  0x13   :  { %s26_s24 = sshll.u32 %s2295_s23, 4  ;;  %p2267_p8 = scmp.ne.s32.totalorder %s2831_s1, %s2266_s27  ;;  %s27_s24 = int_to_ptr.vmem [resolvable:$true] %s26_s24 }
  0x14   :  { %p2270_p9 = scmp.lt.u32.totalorder %s2266_s27, %s2831_s1 }
  0x16   :  { %p2272_p10 = pnand %p2270_p9, %p2267_p8 }
  0x18   :  { %2275 = shalt.err (!%p2272_p10)
}
  0x19   :  { %s2276_s4 = scalar_lea.vmem %s27_s24, 8192  ;;  %p2281_p12 = scmp.lt.s32.totalorder %s27_s24, %s27_s24 }
  0x1a   :  { %p2277_p11 = scmp.ne.s32.totalorder %s27_s24, %s2276_s4  ;;  %p2282_p13 = scmp.lt.s32.totalorder %s2276_s4, %s2276_s4 }
  0x1c   :  { %p2283_p0 = por %p2282_p13, %p2281_p12 }
  0x1e   :  { %p2284_p1 = pnand %p2283_p0, %p2277_p11 }
  0x20   :  { %2287 = shalt.err (!%p2284_p1)
}
  0x21   :  { %32 = dma.hbm_to_vmem [thread:$0]  %s2831_s1, 8192, %s27_s24, [#allocation5], %s2293_s19, %s2293_s19, %s2294_s20  }
  0x22   :  { %2288 = dma.done.wait [#allocation3], 1536  }
  0x23   :  { %2289 = vsyncadd [#allocation3], 4294965760 }
  0x24   :  { %2290 = dma.done.wait [#allocation5], 8192  }
  0x25   :  { %2291 = vsyncadd [#allocation5], 4294959104  ;;  %v2296_v0 = vmov 0   ;;  %v108_v1 = vld [vmem:[#allocation2] sm:$0x30]  ;;  %v40_v8 = vld [vmem:[#allocation4 + $0x8] sm:$0xff] }
  0x26   :  { %2112 = vset.pattern.permute.xlu0 %v2296_v0  ;;  %2113 = vset.pattern.permute.xlu1 %v2296_v0  ;;  %v196_v2 = vld [vmem:[#allocation2] sm:$0xc0]  ;;  %v811_v3 = vld [vmem:[#allocation2 + $0x20] sm:$0x30]  ;;  %v406_v4 = vld [vmem:[#allocation2 + $0x20] sm:$0x3] }
  0x27   :  { %111 = vperm.xlu0 %2112, %v108_v1   ;;  %409 = vperm.xlu1 %2113, %v406_v4   ;;  %v1227_v5 = vld [vmem:[#allocation2 + $0x40] sm:$0x3]  ;;  %v604_v6 = vld [vmem:[#allocation2 + $0x20] sm:$0xc]  ;;  %v1019_v7 = vld [vmem:[#allocation2 + $0x20] sm:$0xc0] }
  0x28   :  { %v44_v9 = vld [vmem:[#allocation4 + $0x28] sm:$0xff]  ;;  %v42_v10 = vld [vmem:[#allocation4 + $0x18] sm:$0xff]  ;;  %v39_v13 = vld [vmem:[#allocation4] sm:$0xff]  ;;  %vm189_vm0 = vcmask 1045508   ;;  %vm194_vm1 = vcmask 5124   ;;  %vm399_vm2 = vcmask 1047558  }
  0x29   :  { %v2337_v11 = vpack.c.bf16 %v44_v9, %v40_v8  ;;  %v46_v12 = vld [vmem:[#allocation4 + $0x38] sm:$0xff]  ;;  %v43_v14 = vld [vmem:[#allocation4 + $0x20] sm:$0xff]  ;;  %v41_v17 = vld [vmem:[#allocation4 + $0x10] sm:$0xff]  ;;  %vm404_vm3 = vcmask 7174   ;;  %vm597_vm4 = vcmask 1041408   ;;  %vm602_vm5 = vcmask 1024  }
  0x2a   :  { %v2339_v15 = vpack.c.bf16 %v46_v12, %v42_v10  ;;  %v2341_v16 = vpack.c.bf16 %v43_v14, %v39_v13  ;;  %v45_v18 = vld [vmem:[#allocation4 + $0x30] sm:$0xff]  ;;  %v48_v20 = vld [vmem:[#allocation4 + $0x48] sm:$0xff]  ;;  %v50_v22 = vld [vmem:[#allocation4 + $0x58] sm:$0xff]  ;;  %vm804_vm6 = vcmask 1043458   ;;  %vm809_vm7 = vcmask 3074  }
  0x2b   :  { %199 = vperm.xlu0 %2112, %v196_v2   ;;  %607 = vperm.xlu1 %2113, %v604_v6   ;;  %v2344_v19 = vpack.c.bf16 %v45_v18, %v41_v17  ;;  %v52_v21 = vld [vmem:[#allocation4 + $0x68] sm:$0xff]  ;;  %v54_v24 = vld [vmem:[#allocation4 + $0x78] sm:$0xff]  ;;  %v47_v25 = vld [vmem:[#allocation4 + $0x40] sm:$0xff] }
  0x2c   :  { %1659 = vmatprep.subr.bf16.mxu0 %v2337_v11  ;;  %1691 = vmatprep.subr.bf16.mxu1 %v2339_v15  ;;  %v2349_v23 = vpack.c.bf16 %v52_v21, %v48_v20  ;;  %v51_v26 = vld [vmem:[#allocation4 + $0x60] sm:$0xff]  ;;  %v2351_v27 = vpack.c.bf16 %v54_v24, %v50_v22  ;;  %v49_v29 = vld [vmem:[#allocation4 + $0x50] sm:$0xff]  ;;  %v56_v32 = vld [vmem:[#allocation4 + $0x88] sm:$0xff]  ;;  %v2833_v20 = vmov 0.0  }
  0x2d   :  { %1661 = vmatpush1.bf16.msra.mxu0 %v2341_v16  ;;  %1693 = vmatpush1.bf16.msra.mxu1 %v2344_v19  ;;  %v2353_v28 = vpack.c.bf16 %v51_v26, %v47_v25  ;;  %v53_v30 = vld [vmem:[#allocation4 + $0x70] sm:$0xff]  ;;  %v60_v33 = vld [vmem:[#allocation4 + $0xa8] sm:$0xff]  ;;  %v58_v34 = vld [vmem:[#allocation4 + $0x98] sm:$0xff] }
  0x2e   :  { %1663 = vmatprep.subr.bf16.mxu0 %v2349_v23  ;;  %v2356_v31 = vpack.c.bf16 %v53_v30, %v49_v29  ;;  %1695 = vmatprep.subr.bf16.mxu1 %v2351_v27  ;;  %v2361_v35 = vpack.c.bf16 %v60_v33, %v56_v32  ;;  %v62_v36 = vld [vmem:[#allocation4 + $0xb8] sm:$0xff]  ;;  %v55_v37 = vld [vmem:[#allocation4 + $0x80] sm:$0xff]  ;;  %v57_v41 = vld [vmem:[#allocation4 + $0x90] sm:$0xff] }
  0x2f   :  { %814 = vperm.xlu0 %2112, %v811_v3   ;;  %1022 = vperm.xlu1 %2113, %v1019_v7   ;;  %v59_v38 = vld [vmem:[#allocation4 + $0xa0] sm:$0xff]  ;;  %v2363_v39 = vpack.c.bf16 %v62_v36, %v58_v34  ;;  %v61_v42 = vld [vmem:[#allocation4 + $0xb0] sm:$0xff]  ;;  %v64_v44 = vld [vmem:[#allocation4 + $0xc8] sm:$0xff] }
  0x30   :  { %v2365_v40 = vpack.c.bf16 %v59_v38, %v55_v37  ;;  %v2368_v43 = vpack.c.bf16 %v61_v42, %v57_v41  ;;  %v68_v45 = vld [vmem:[#allocation4 + $0xe8] sm:$0xff]  ;;  %v66_v46 = vld [vmem:[#allocation4 + $0xd8] sm:$0xff]  ;;  %v63_v49 = vld [vmem:[#allocation4 + $0xc0] sm:$0xff]  ;;  %277 = vmatprep.mubr.f32.mxu0 %v2833_v20  ;;  %348 = vmatprep.mubr.f32.mxu1 %v2833_v20 }
  0x31   :  { %1665 = vmatpush1.bf16.msra.mxu0 %v2353_v28  ;;  %1697 = vmatpush1.bf16.msra.mxu1 %v2356_v31  ;;  %v2373_v47 = vpack.c.bf16 %v68_v45, %v64_v44  ;;  %v70_v48 = vld [vmem:[#allocation4 + $0xf8] sm:$0xff]  ;;  %v67_v50 = vld [vmem:[#allocation4 + $0xe0] sm:$0xff]  ;;  %v65_v53 = vld [vmem:[#allocation4 + $0xd0] sm:$0xff] }
  0x32   :  { %1667 = vmatprep.subr.bf16.mxu0 %v2361_v35  ;;  %1699 = vmatprep.subr.bf16.mxu1 %v2363_v39  ;;  %v2375_v51 = vpack.c.bf16 %v70_v48, %v66_v46  ;;  %v2377_v52 = vpack.c.bf16 %v67_v50, %v63_v49  ;;  %v69_v54 = vld [vmem:[#allocation4 + $0xf0] sm:$0xff]  ;;  %v72_v56 = vld [vmem:[#allocation4 + $0x108] sm:$0xff]  ;;  %v74_v58 = vld [vmem:[#allocation4 + $0x118] sm:$0xff] }
  0x33   :  { %1230 = vperm.xlu0 %2112, %v1227_v5   ;;  %v2380_v55 = vpack.c.bf16 %v69_v54, %v65_v53  ;;  %v76_v57 = vld [vmem:[#allocation4 + $0x128] sm:$0xff]  ;;  %v78_v60 = vld [vmem:[#allocation4 + $0x138] sm:$0xff]  ;;  %v71_v61 = vld [vmem:[#allocation4 + $0x100] sm:$0xff] }
  0x34   :  { %v2385_v59 = vpack.c.bf16 %v76_v57, %v72_v56  ;;  %v75_v62 = vld [vmem:[#allocation4 + $0x120] sm:$0xff]  ;;  %v2387_v63 = vpack.c.bf16 %v78_v60, %v74_v58  ;;  %v73_v1 = vld [vmem:[#allocation4 + $0x110] sm:$0xff]  ;;  %v80_v4 = vld [vmem:[#allocation4 + $0x148] sm:$0xff]  ;;  %v115_v57 = vlaneseq }
  0x35   :  { %1669 = vmatpush1.bf16.msra.mxu0 %v2365_v40  ;;  %1701 = vmatpush1.bf16.msra.mxu1 %v2368_v43  ;;  %v2389_v0 = vpack.c.bf16 %v75_v62, %v71_v61  ;;  %v77_v2 = vld [vmem:[#allocation4 + $0x130] sm:$0xff]  ;;  %v84_v5 = vld [vmem:[#allocation4 + $0x168] sm:$0xff]  ;;  %v82_v6 = vld [vmem:[#allocation4 + $0x158] sm:$0xff] }
  0x36   :  { %1671 = vmatprep.subr.bf16.mxu0 %v2373_v47  ;;  %1703 = vmatprep.subr.bf16.mxu1 %v2375_v51  ;;  %v2392_v3 = vpack.c.bf16 %v77_v2, %v73_v1  ;;  %v2396_v7 = vpack.c.bf16 %v84_v5, %v80_v4  ;;  %v86_v8 = vld [vmem:[#allocation4 + $0x178] sm:$0xff]  ;;  %v79_v9 = vld [vmem:[#allocation4 + $0x140] sm:$0xff]  ;;  %v81_v14 = vld [vmem:[#allocation4 + $0x150] sm:$0xff]  ;;  %v116_v58 = vshrl.u32 %v115_v57, 7 }
  0x37   :  { %v83_v10 = vld [vmem:[#allocation4 + $0x160] sm:$0xff]  ;;  %v2399_v12 = vpack.c.bf16 %v86_v8, %v82_v6  ;;  %v85_v17 = vld [vmem:[#allocation4 + $0x170] sm:$0xff]  ;;  %v88_v18 = vld [vmem:[#allocation4 + $0x188] sm:$0xff] }
  0x38   :  { %v2401_v13 = vpack.c.bf16 %v83_v10, %v79_v9  ;;  %v2405_v21 = vpack.c.bf16 %v85_v17, %v81_v14  ;;  %v92_v22 = vld [vmem:[#allocation4 + $0x1a8] sm:$0xff]  ;;  %v90_v24 = vld [vmem:[#allocation4 + $0x198] sm:$0xff]  ;;  %v87_v30 = vld [vmem:[#allocation4 + $0x180] sm:$0xff]  ;;  %v117_v60 = vsub.s32 0, %v116_v58  ;;  %v121_v61 = vsub.s32 1, %v116_v58 }
  0x39   :  { %1673 = vmatpush1.bf16.msra.mxu0 %v2377_v52  ;;  %1705 = vmatpush1.bf16.msra.mxu1 %v2380_v55  ;;  %v94_v25 = vld [vmem:[#allocation4 + $0x1b8] sm:$0xff]  ;;  %v2409_v26 = vpack.c.bf16 %v92_v22, %v88_v18  ;;  %v91_v32 = vld [vmem:[#allocation4 + $0x1a0] sm:$0xff]  ;;  %v89_v33 = vld [vmem:[#allocation4 + $0x190] sm:$0xff]  ;;  %v129_v5 = vsub.s32 3, %v116_v58  ;;  %v125_v18 = vsub.s32 2, %v116_v58 }
  0x3a   :  { %1675 = vmatprep.subr.bf16.mxu0 %v2385_v59  ;;  %1707 = vmatprep.subr.bf16.mxu1 %v2387_v63  ;;  %v2411_v29 = vpack.c.bf16 %v94_v25, %v90_v24  ;;  %v2414_v34 = vpack.c.bf16 %v91_v32, %v87_v30  ;;  %v93_v36 = vld [vmem:[#allocation4 + $0x1b0] sm:$0xff]  ;;  %v96_v37 = vld [vmem:[#allocation4 + $0x1c8] sm:$0xff]  ;;  %v98_v44 = vld [vmem:[#allocation4 + $0x1d8] sm:$0xff] }
  0x3b   :  { %v100_v38 = vld [vmem:[#allocation4 + $0x1e8] sm:$0xff]  ;;  %v2418_v41 = vpack.c.bf16 %v93_v36, %v89_v33  ;;  %v102_v45 = vld [vmem:[#allocation4 + $0x1f8] sm:$0xff]  ;;  %v95_v46 = vld [vmem:[#allocation4 + $0x1c0] sm:$0xff] }
  0x3c   :  { %v2420_v42 = vpack.c.bf16 %v100_v38, %v96_v37  ;;  %v2423_v48 = vpack.c.bf16 %v102_v45, %v98_v44  ;;  %v99_v49 = vld [vmem:[#allocation4 + $0x1e0] sm:$0xff]  ;;  %v97_v50 = vld [vmem:[#allocation4 + $0x1d0] sm:$0xff] }
  0x3d   :  { %1677 = vmatpush1.bf16.msra.mxu0 %v2389_v0  ;;  %1709 = vmatpush1.bf16.msra.mxu1 %v2392_v3  ;;  %v101_v53 = vld [vmem:[#allocation4 + $0x1f0] sm:$0xff]  ;;  %v2426_v54 = vpack.c.bf16 %v99_v49, %v95_v46 }
  0x3e   :  { %1679 = vmatprep.subr.bf16.mxu0 %v2396_v7  ;;  %1711 = vmatprep.subr.bf16.mxu1 %v2399_v12  ;;  %v2430_v56 = vpack.c.bf16 %v101_v53, %v97_v50  ;;  %v103_v62 = vld [vmem:[#allocation2] ss:$8 sm:$0xf]  ;;  %v105_v1 = vld [vmem:[#allocation2 + $0x1] ss:$8 sm:$0xf] }
  0x3f   :  { %v2437_v2 = vrot.slane %v103_v62, %v117_v60  ;;  %v2439_v4 = vrot.slane %v103_v62, %v121_v61  ;;  %v2441_v6 = vrot.slane %v105_v1, %v117_v60  ;;  %v2443_v8 = vrot.slane %v105_v1, %v121_v61 }
  0x40   :  { %v2447_v17 = vrot.slane %v103_v62, %v129_v5  ;;  %v2452_v33 = vrot.slane %v105_v1, %v129_v5  ;;  %v2454_v36 = vrot.slane %v103_v62, %v125_v18  ;;  %v2458_v44 = vrot.slane %v105_v1, %v125_v18 }
  0x41   :  { %1681 = vmatpush1.bf16.msra.mxu0 %v2401_v13  ;;  %1713 = vmatpush1.bf16.msra.mxu1 %v2405_v21  ;;  %2849 = vst [vmem:[#allocation8_spill] sm:$0xff] %v2439_v4  ;;  %2850 = vst [vmem:[#allocation9_spill] sm:$0xff] %v2441_v6 }
  0x42   :  { %1683 = vmatprep.subr.bf16.mxu0 %v2409_v26  ;;  %1715 = vmatprep.subr.bf16.mxu1 %v2411_v29  ;;  %2851 = vst [vmem:[#allocation10_spill] sm:$0xff] %v2447_v17  ;;  %2852 = vst [vmem:[#allocation11_spill] sm:$0xff] %v2454_v36 }
  0x43   :  { %2853 = vst [vmem:[#allocation12_spill] sm:$0xff] %v2458_v44 }
  0x45   :  { %1685 = vmatpush1.bf16.msra.mxu0 %v2414_v34  ;;  %1717 = vmatpush1.bf16.msra.mxu1 %v2418_v41 }
  0x46   :  { %1687 = vmatprep.subr.bf16.mxu0 %v2420_v42  ;;  %1719 = vmatprep.subr.bf16.mxu1 %v2423_v48 }
  0x49   :  { %1689 = vmatpush1.bf16.msra.mxu0 %v2426_v54  ;;  %1721 = vmatpush1.bf16.msra.mxu1 %v2430_v56 }
  0x4a   :  { %1723 = vmatprep.subr.bf16.mxu0 %v2337_v11  ;;  %1755 = vmatprep.subr.bf16.mxu1 %v2339_v15 }
  0xa6   :  { %v112_v9 = vpop.permute.xlu0 %111 }
  0xa7   :  { %v135_v10 = vmul.f32 %v2437_v2, %v112_v9  ;;  %v136_v14 = vmul.f32 %v2439_v4, %v112_v9  ;;  %v138_v32 = vmul.f32 %v2447_v17, %v112_v9  ;;  %v137_v38 = vmul.f32 %v2454_v36, %v112_v9 }
  0xa9   :  { %v160_v22 = vadd.f32 %v2441_v6, %v135_v10  ;;  %v161_v24 = vadd.f32 %v2443_v8, %v136_v14  ;;  %v163_v37 = vadd.f32 %v2452_v33, %v138_v32  ;;  %v162_v46 = vadd.f32 %v2458_v44, %v137_v38 }
  0xab   :  { %v1634_v25 = vmul.f32 -1.442695, %v160_v22  ;;  %v1635_v30 = vmul.f32 -1.442695, %v161_v24  ;;  %v1636_v45 = vmul.f32 -1.442695, %v163_v37  ;;  %v2502_v37 = vpop.permute.xlu1 %409 }
  0xac   :  { %v2464_v22 = vld [vmem:[#allocation2 + $0x2] ss:$0 sm:$0xff] }
  0xad   :  { %2114 = vpow2.f32 %v1634_v25 }
  0xae   :  { %2116 = vpow2.f32 %v1635_v30 }
  0xaf   :  { %2118 = vpow2.f32 %v1636_v45  ;;  %v2504_v38 = vpop.permute.xlu1 %607 }
  0xb0   :  { %2120 = vtanh.f32 %v162_v46  ;;  %2854 = vst [vmem:[#allocation13_spill] sm:$0xff] %v2504_v38  ;;  %v2508_v46 = vld [vmem:[#allocation2 + $0x3] ss:$0 sm:$0xff] }
  0xb3   :  { %v2506_v45 = vpop.permute.xlu1 %1022 }
  0xb4   :  { %2855 = vst [vmem:[#allocation14_spill] sm:$0xff] %v2506_v45 }
  0xb7   :  { %v2115_v49 = vpop.eup %2114 }
  0xb8   :  { %v2117_v50 = vpop.eup %2116  ;;  %v167_v53 = vadd.f32 1.0, %v2115_v49 }
  0xb9   :  { %v173_v57 = vadd.f32 1.0, %v2117_v50  ;;  %v2119_v58 = vpop.eup %2118 }
  0xba   :  { %2122 = vrcp.f32 %v167_v53  ;;  %v2121_v60 = vpop.eup %2120  ;;  %v180_v5 = vadd.f32 1.0, %v2119_v58  ;;  %v200_v53 = vpop.permute.xlu0 %199 }
  0xbb   :  { %2124 = vrcp.f32 %v173_v57  ;;  %v202_v57 = vmul.f32 %v200_v53, %v2437_v2  ;;  %v203_v58 = vmul.f32 %v200_v53, %v2439_v4  ;;  %v204_v45 = vmul.f32 %v200_v53, %v2454_v36 }
  0xbc   :  { %2126 = vrcp.f32 %v180_v5 }
  0xbd   :  { %v208_v38 = vadd.f32 %v204_v45, %v2458_v44 }
  0xc4   :  { %v2123_v61 = vpop.eup %2122 }
  0xc5   :  { %v2125_v62 = vpop.eup %2124  ;;  %v184_v10 = vmul.f32 %v2123_v61, %v2121_v60 }
  0xc6   :  { %v183_v9 = vmul.f32 0.0, %v2125_v62  ;;  %v2127_v14 = vpop.eup %2126  ;;  %v206_v62 = vadd.f32 %v202_v57, %v2441_v6 }
  0xc8   :  { %v2461_v1 = vadd.f32 %v184_v10, %v183_v9 }
  0xca   :  { %2128 = vtanh.f32 %v2461_v1 }
  0xd4   :  { %v2129_v18 = vpop.eup %2128 }
  0xd5   :  { %v187_v24 = vmul.f32 %v2129_v18, %v2127_v14  ;;  %v207_v14 = vadd.f32 %v203_v58, %v2443_v8 }
  0xd7   :  { %v211_v25 = vrot.slane %v187_v24, 4  ;;  %v188_v30 = vmul.f32 %v187_v24, %v2464_v22 }
  0xd9   :  { %278 = vmatmul.mubr.f32.vlgmr.msra.gmra.mrb[0].mxu0 %v211_v25  ;;  %349 = vmatmul.mubr.f32.vlgmr.msra.gmra.mrb[0].mxu1 %v211_v25  ;;  %v190_v32 = vsel %vm189_vm0, %v188_v30, 0.0  ;;  %v205_v25 = vmul.f32 %v200_v53, %v2447_v17 }
  0xda   :  { %191 = vadd.xlane.f32.xlu1 %v190_v32  ;;  %1725 = vmatpush1.bf16.msra.mxu0 %v2341_v16 }
  0xdb   :  { %1757 = vmatpush1.bf16.msra.mxu1 %v2344_v19  ;;  %1727 = vmatprep.subr.bf16.mxu0 %v2349_v23 }
  0xdc   :  { %1759 = vmatprep.subr.bf16.mxu1 %v2351_v27  ;;  %487 = vmatprep.mubr.f32.mxu0 %v2833_v20 }
  0xdd   :  { %558 = vmatprep.mubr.f32.mxu1 %v2833_v20  ;;  %v209_v20 = vadd.f32 %v205_v25, %v2452_v33  ;;  %v391_v25 = vrot.slane %v2461_v1, 6 }
  0xde   :  { %1729 = vmatpush1.bf16.msra.mxu0 %v2353_v28 }
  0xdf   :  { %1761 = vmatpush1.bf16.msra.mxu1 %v2356_v31  ;;  %1731 = vmatprep.subr.bf16.mxu0 %v2361_v35 }
  0xe0   :  { %1763 = vmatprep.subr.bf16.mxu1 %v2363_v39 }
  0xe2   :  { %1733 = vmatpush1.bf16.msra.mxu0 %v2365_v40 }
  0xe3   :  { %1765 = vmatpush1.bf16.msra.mxu1 %v2368_v43  ;;  %1735 = vmatprep.subr.bf16.mxu0 %v2373_v47 }
  0xe4   :  { %1767 = vmatprep.subr.bf16.mxu1 %v2375_v51 }
  0xe6   :  { %1737 = vmatpush1.bf16.msra.mxu0 %v2377_v52 }
  0xe7   :  { %1769 = vmatpush1.bf16.msra.mxu1 %v2380_v55  ;;  %1739 = vmatprep.subr.bf16.mxu0 %v2385_v59 }
  0xe8   :  { %1771 = vmatprep.subr.bf16.mxu1 %v2387_v63 }
  0xea   :  { %1741 = vmatpush1.bf16.msra.mxu0 %v2389_v0 }
  0xeb   :  { %1773 = vmatpush1.bf16.msra.mxu1 %v2392_v3  ;;  %1743 = vmatprep.subr.bf16.mxu0 %v2396_v7 }
  0xec   :  { %1775 = vmatprep.subr.bf16.mxu1 %v2399_v12 }
  0xee   :  { %1745 = vmatpush1.bf16.msra.mxu0 %v2401_v13 }
  0xef   :  { %1777 = vmatpush1.bf16.msra.mxu1 %v2405_v21  ;;  %1747 = vmatprep.subr.bf16.mxu0 %v2409_v26 }
  0xf0   :  { %1779 = vmatprep.subr.bf16.mxu1 %v2411_v29 }
  0xf2   :  { %1749 = vmatpush1.bf16.msra.mxu0 %v2414_v34 }
  0xf3   :  { %1781 = vmatpush1.bf16.msra.mxu1 %v2418_v41  ;;  %1751 = vmatprep.subr.bf16.mxu0 %v2420_v42 }
  0xf4   :  { %1783 = vmatprep.subr.bf16.mxu1 %v2423_v48 }
  0xf6   :  { %1753 = vmatpush1.bf16.msra.mxu0 %v2426_v54 }
  0xf7   :  { %1785 = vmatpush1.bf16.msra.mxu1 %v2430_v56  ;;  %1787 = vmatprep.subr.bf16.mxu0 %v2337_v11 }
  0xf8   :  { %1819 = vmatprep.subr.bf16.mxu1 %v2339_v15 }
 0x167   :  { %v192_v49 = vpop.xlane.xlu1 %191 }
 0x168   :  { %v193_v50 = vadd.f32 %v192_v49, %v2508_v46 }
 0x16a   :  { %195 = vst.msk [vmem:[%s2832_s2 - $0x4] sm:$0x30] %vm194_vm1, %v193_v50 }
 0x1ac   :  { %v279_v60 = vpop.f32.mrb[0].mxu0  ;;  %v350_v61 = vpop.f32.mrb[0].mxu1 }
 0x1ad   :  { %v359_v5 = vrot.slane %v279_v60, 2  ;;  %v281_v10 = vpop.f32.mrb[1].mxu0  ;;  %v352_v9 = vpop.f32.mrb[1].mxu1  ;;  %v361_v60 = vrot.slane %v350_v61, 2 }
 0x1ae   :  { %v360_v18 = vrot.slane %v281_v10, 2  ;;  %v362_v50 = vrot.slane %v352_v9, 2 }
 0x1af   :  { %v367_v24 = vadd.f32 %v359_v5, %v206_v62  ;;  %v369_v58 = vadd.f32 %v361_v60, %v208_v38  ;;  %v2563_v60 = vpop.permute.xlu0 %814 }
 0x1b0   :  { %v368_v30 = vadd.f32 %v360_v18, %v207_v14  ;;  %v370_v57 = vadd.f32 %v362_v50, %v209_v20  ;;  %2857 = vst [vmem:[#allocation15_spill] sm:$0xff] %v2563_v60 }
 0x1b1   :  { %v1637_v32 = vmul.f32 -1.442695, %v367_v24 }
 0x1b2   :  { %v1638_v49 = vmul.f32 -1.442695, %v368_v30  ;;  %v1639_v6 = vmul.f32 -1.442695, %v370_v57  ;;  %v2856_v57 = vmov 0.0  }
 0x1b3   :  { %2130 = vpow2.f32 %v1637_v32 }
 0x1b4   :  { %2132 = vpow2.f32 %v1638_v49 }
 0x1b5   :  { %2134 = vpow2.f32 %v1639_v6 }
 0x1b6   :  { %2136 = vtanh.f32 %v369_v58  ;;  %v2565_v58 = vpop.permute.xlu0 %1230 }
 0x1b7   :  { %2858 = vst [vmem:[#allocation16_spill] sm:$0xff] %v2565_v58 }
 0x1bd   :  { %v2131_v10 = vpop.eup %2130 }
 0x1be   :  { %v2133_v62 = vpop.eup %2132  ;;  %v374_v5 = vadd.f32 1.0, %v2131_v10 }
 0x1bf   :  { %v380_v14 = vadd.f32 1.0, %v2133_v62  ;;  %v2135_v9 = vpop.eup %2134 }
 0x1c0   :  { %2138 = vrcp.f32 %v374_v5  ;;  %v2137_v18 = vpop.eup %2136  ;;  %v387_v61 = vadd.f32 1.0, %v2135_v9  ;;  %v412_v5 = vmul.f32 %v2502_v37, %v2437_v2  ;;  %v2859_v9 = vld [vmem:[#allocation9_spill] sm:$0xff] }
 0x1c1   :  { %2140 = vrcp.f32 %v380_v14  ;;  %v413_v14 = vmul.f32 %v2502_v37, %v2439_v4 }
 0x1c2   :  { %2142 = vrcp.f32 %v387_v61 }
 0x1ca   :  { %v2139_v24 = vpop.eup %2138 }
 0x1cb   :  { %v2141_v53 = vpop.eup %2140  ;;  %v394_v20 = vmul.f32 %v2139_v24, %v2137_v18  ;;  %v416_v18 = vadd.f32 %v412_v5, %v2859_v9  ;;  %v417_v24 = vadd.f32 %v413_v14, %v2443_v8 }
 0x1cc   :  { %v393_v30 = vmul.f32 %v2141_v53, %v391_v25  ;;  %v2143_v38 = vpop.eup %2142 }
 0x1ce   :  { %v2524_v45 = vadd.f32 %v394_v20, %v393_v30  ;;  %v415_v20 = vmul.f32 %v2502_v37, %v2447_v17 }
 0x1d0   :  { %2144 = vtanh.f32 %v2524_v45 }
 0x1da   :  { %v2145_v6 = vpop.eup %2144 }
 0x1db   :  { %v397_v32 = vmul.f32 %v2145_v6, %v2143_v38 }
 0x1dd   :  { %v421_v49 = vrot.slane %v397_v32, 6  ;;  %v398_v50 = vmul.f32 %v397_v32, %v2464_v22 }
 0x1df   :  { %488 = vmatmul.mubr.f32.vlgmr.msra.gmra.mrb[2].mxu0 %v421_v49  ;;  %559 = vmatmul.mubr.f32.vlgmr.msra.gmra.mrb[2].mxu1 %v421_v49  ;;  %v400_v1 = vsel %vm399_vm2, %v398_v50, 0.0  ;;  %v419_v50 = vadd.f32 %v415_v20, %v2452_v33 }
 0x1e0   :  { %401 = vadd.xlane.f32.xlu0 %v400_v1  ;;  %1789 = vmatpush1.bf16.msra.mxu0 %v2341_v16  ;;  %v414_v1 = vmul.f32 %v2502_v37, %v2454_v36 }
 0x1e1   :  { %1821 = vmatpush1.bf16.msra.mxu1 %v2344_v19  ;;  %1791 = vmatprep.subr.bf16.mxu0 %v2349_v23 }
 0x1e2   :  { %1823 = vmatprep.subr.bf16.mxu1 %v2351_v27  ;;  %682 = vmatprep.mubr.f32.mxu0 %v2856_v57 }
 0x1e3   :  { %753 = vmatprep.mubr.f32.mxu1 %v2856_v57 }
 0x1e4   :  { %1793 = vmatpush1.bf16.msra.mxu0 %v2353_v28 }
 0x1e5   :  { %1825 = vmatpush1.bf16.msra.mxu1 %v2356_v31  ;;  %1795 = vmatprep.subr.bf16.mxu0 %v2361_v35 }
 0x1e6   :  { %1827 = vmatprep.subr.bf16.mxu1 %v2363_v39 }
 0x1e8   :  { %1797 = vmatpush1.bf16.msra.mxu0 %v2365_v40 }
 0x1e9   :  { %1829 = vmatpush1.bf16.msra.mxu1 %v2368_v43  ;;  %1799 = vmatprep.subr.bf16.mxu0 %v2373_v47 }
 0x1ea   :  { %1831 = vmatprep.subr.bf16.mxu1 %v2375_v51 }
 0x1ec   :  { %1801 = vmatpush1.bf16.msra.mxu0 %v2377_v52 }
 0x1ed   :  { %1833 = vmatpush1.bf16.msra.mxu1 %v2380_v55  ;;  %1803 = vmatprep.subr.bf16.mxu0 %v2385_v59 }
 0x1ee   :  { %1835 = vmatprep.subr.bf16.mxu1 %v2387_v63 }
 0x1f0   :  { %1805 = vmatpush1.bf16.msra.mxu0 %v2389_v0 }
 0x1f1   :  { %1837 = vmatpush1.bf16.msra.mxu1 %v2392_v3  ;;  %1807 = vmatprep.subr.bf16.mxu0 %v2396_v7 }
 0x1f2   :  { %1839 = vmatprep.subr.bf16.mxu1 %v2399_v12 }
 0x1f4   :  { %1809 = vmatpush1.bf16.msra.mxu0 %v2401_v13 }
 0x1f5   :  { %1841 = vmatpush1.bf16.msra.mxu1 %v2405_v21  ;;  %1811 = vmatprep.subr.bf16.mxu0 %v2409_v26 }
 0x1f6   :  { %1843 = vmatprep.subr.bf16.mxu1 %v2411_v29 }
 0x1f8   :  { %1813 = vmatpush1.bf16.msra.mxu0 %v2414_v34 }
 0x1f9   :  { %1845 = vmatpush1.bf16.msra.mxu1 %v2418_v41  ;;  %1815 = vmatprep.subr.bf16.mxu0 %v2420_v42 }
 0x1fa   :  { %1847 = vmatprep.subr.bf16.mxu1 %v2423_v48 }
 0x1fc   :  { %1817 = vmatpush1.bf16.msra.mxu0 %v2426_v54 }
 0x1fd   :  { %1849 = vmatpush1.bf16.msra.mxu1 %v2430_v56  ;;  %1851 = vmatprep.subr.bf16.mxu0 %v2337_v11 }
 0x1fe   :  { %1883 = vmatprep.subr.bf16.mxu1 %v2339_v15 }
 0x26d   :  { %v402_v10 = vpop.xlane.xlu0 %401 }
 0x26e   :  { %v403_v62 = vadd.f32 %v402_v10, %v2508_v46 }
 0x270   :  { %405 = vst.msk [vmem:[%s2832_s2 - $0x4] sm:$0xc0] %vm404_vm3, %v403_v62  ;;  %v418_v62 = vadd.f32 %v414_v1, %v2458_v44 }
 0x2b2   :  { %v489_v25 = vpop.f32.mrb[2].mxu0  ;;  %v560_v53 = vpop.f32.mrb[2].mxu1 }
 0x2b3   :  { %v565_v61 = vadd.f32 %v489_v25, %v416_v18  ;;  %v491_v30 = vpop.f32.mrb[3].mxu0  ;;  %v562_v38 = vpop.f32.mrb[3].mxu1  ;;  %v567_v14 = vadd.f32 %v560_v53, %v418_v62  ;;  %v2860_v62 = vld [vmem:[#allocation13_spill] sm:$0xff] }
 0x2b4   :  { %v566_v6 = vadd.f32 %v491_v30, %v417_v24  ;;  %v568_v10 = vadd.f32 %v562_v38, %v419_v50  ;;  %v589_v30 = vrot.slane %v2524_v45, 6 }
 0x2b5   :  { %v1640_v32 = vmul.f32 -1.442695, %v565_v61 }
 0x2b6   :  { %v1641_v49 = vmul.f32 -1.442695, %v566_v6  ;;  %v1642_v5 = vmul.f32 -1.442695, %v568_v10 }
 0x2b7   :  { %2146 = vpow2.f32 %v1640_v32 }
 0x2b8   :  { %2148 = vpow2.f32 %v1641_v49 }
 0x2b9   :  { %2150 = vpow2.f32 %v1642_v5  ;;  %v610_v5 = vmul.f32 %v2860_v62, %v2437_v2 }
 0x2ba   :  { %2152 = vtanh.f32 %v567_v14  ;;  %v612_v14 = vmul.f32 %v2860_v62, %v2454_v36 }
 0x2c1   :  { %v2147_v58 = vpop.eup %2146 }
 0x2c2   :  { %v2149_v60 = vpop.eup %2148  ;;  %v572_v18 = vadd.f32 1.0, %v2147_v58 }
 0x2c3   :  { %v578_v24 = vadd.f32 1.0, %v2149_v60  ;;  %v2151_v25 = vpop.eup %2150 }
 0x2c4   :  { %2154 = vrcp.f32 %v572_v18  ;;  %v2153_v20 = vpop.eup %2152  ;;  %v585_v38 = vadd.f32 1.0, %v2151_v25  ;;  %v611_v18 = vmul.f32 %v2860_v62, %v2439_v4 }
 0x2c5   :  { %2156 = vrcp.f32 %v578_v24  ;;  %v613_v24 = vmul.f32 %v2860_v62, %v2447_v17 }
 0x2c6   :  { %2158 = vrcp.f32 %v585_v38 }
 0x2ce   :  { %v2155_v61 = vpop.eup %2154 }
 0x2cf   :  { %v2157_v37 = vpop.eup %2156  ;;  %v592_v6 = vmul.f32 %v2155_v61, %v2153_v20  ;;  %v614_v61 = vadd.f32 %v610_v5, %v2859_v9 }
 0x2d0   :  { %v591_v32 = vmul.f32 %v2157_v37, %v589_v30  ;;  %v2159_v58 = vpop.eup %2158  ;;  %v616_v37 = vadd.f32 %v612_v14, %v2458_v44 }
 0x2d2   :  { %v2585_v49 = vadd.f32 %v592_v6, %v591_v32 }
 0x2d4   :  { %2160 = vtanh.f32 %v2585_v49 }
 0x2de   :  { %v2161_v53 = vpop.eup %2160 }
 0x2df   :  { %v595_v50 = vmul.f32 %v2161_v53, %v2159_v58  ;;  %v615_v58 = vadd.f32 %v611_v18, %v2443_v8 }
 0x2e1   :  { %683 = vmatmul.mubr.f32.vlgmr.msra.gmra.mrb[4].mxu0 %v595_v50  ;;  %754 = vmatmul.mubr.f32.vlgmr.msra.gmra.mrb[4].mxu1 %v595_v50  ;;  %v596_v60 = vmul.f32 %v595_v50, %v2464_v22  ;;  %v617_v50 = vadd.f32 %v613_v24, %v2452_v33 }
 0x2e2   :  { %1853 = vmatpush1.bf16.msra.mxu0 %v2341_v16  ;;  %1885 = vmatpush1.bf16.msra.mxu1 %v2344_v19 }
 0x2e3   :  { %v598_v45 = vsel %vm597_vm4, %v596_v60, 0.0  ;;  %1855 = vmatprep.subr.bf16.mxu0 %v2349_v23  ;;  %1887 = vmatprep.subr.bf16.mxu1 %v2351_v27 }
 0x2e4   :  { %599 = vadd.xlane.f32.xlu0 %v598_v45  ;;  %892 = vmatprep.mubr.f32.mxu0 %v2856_v57 }
 0x2e5   :  { %963 = vmatprep.mubr.f32.mxu1 %v2856_v57 }
 0x2e6   :  { %1857 = vmatpush1.bf16.msra.mxu0 %v2353_v28  ;;  %1889 = vmatpush1.bf16.msra.mxu1 %v2356_v31 }
 0x2e7   :  { %1859 = vmatprep.subr.bf16.mxu0 %v2361_v35  ;;  %1891 = vmatprep.subr.bf16.mxu1 %v2363_v39 }
 0x2ea   :  { %1861 = vmatpush1.bf16.msra.mxu0 %v2365_v40  ;;  %1893 = vmatpush1.bf16.msra.mxu1 %v2368_v43 }
 0x2eb   :  { %1863 = vmatprep.subr.bf16.mxu0 %v2373_v47  ;;  %1895 = vmatprep.subr.bf16.mxu1 %v2375_v51 }
 0x2ee   :  { %1865 = vmatpush1.bf16.msra.mxu0 %v2377_v52  ;;  %1897 = vmatpush1.bf16.msra.mxu1 %v2380_v55 }
 0x2ef   :  { %1867 = vmatprep.subr.bf16.mxu0 %v2385_v59  ;;  %1899 = vmatprep.subr.bf16.mxu1 %v2387_v63 }
 0x2f2   :  { %1869 = vmatpush1.bf16.msra.mxu0 %v2389_v0  ;;  %1901 = vmatpush1.bf16.msra.mxu1 %v2392_v3 }
 0x2f3   :  { %1871 = vmatprep.subr.bf16.mxu0 %v2396_v7  ;;  %1903 = vmatprep.subr.bf16.mxu1 %v2399_v12 }
 0x2f6   :  { %1873 = vmatpush1.bf16.msra.mxu0 %v2401_v13  ;;  %1905 = vmatpush1.bf16.msra.mxu1 %v2405_v21 }
 0x2f7   :  { %1875 = vmatprep.subr.bf16.mxu0 %v2409_v26  ;;  %1907 = vmatprep.subr.bf16.mxu1 %v2411_v29 }
 0x2fa   :  { %1877 = vmatpush1.bf16.msra.mxu0 %v2414_v34  ;;  %1909 = vmatpush1.bf16.msra.mxu1 %v2418_v41 }
 0x2fb   :  { %1879 = vmatprep.subr.bf16.mxu0 %v2420_v42  ;;  %1911 = vmatprep.subr.bf16.mxu1 %v2423_v48 }
 0x2fe   :  { %1881 = vmatpush1.bf16.msra.mxu0 %v2426_v54  ;;  %1913 = vmatpush1.bf16.msra.mxu1 %v2430_v56 }
 0x2ff   :  { %1915 = vmatprep.subr.bf16.mxu0 %v2337_v11  ;;  %1947 = vmatprep.subr.bf16.mxu1 %v2339_v15 }
 0x371   :  { %v600_v1 = vpop.xlane.xlu0 %599 }
 0x372   :  { %v601_v10 = vadd.f32 %v600_v1, %v2508_v46 }
 0x374   :  { %603 = vst.msk [vmem:[%s2832_s2 + $0x4] sm:$0x3] %vm602_vm5, %v601_v10 }
 0x3b4   :  { %v684_v25 = vpop.f32.mrb[4].mxu0  ;;  %v755_v20 = vpop.f32.mrb[4].mxu1 }
 0x3b5   :  { %v764_v30 = vrot.slane %v684_v25, 6  ;;  %v766_v6 = vrot.slane %v755_v20, 6  ;;  %v686_v38 = vpop.f32.mrb[5].mxu0  ;;  %v757_v32 = vpop.f32.mrb[5].mxu1 }
 0x3b6   :  { %v765_v53 = vrot.slane %v686_v38, 6  ;;  %v767_v60 = vrot.slane %v757_v32, 6 }
 0x3b7   :  { %v772_v45 = vadd.f32 %v764_v30, %v614_v61  ;;  %v774_v1 = vadd.f32 %v766_v6, %v616_v37  ;;  %v796_v61 = vrot.slane %v2585_v49, 6 }
 0x3b8   :  { %v773_v10 = vadd.f32 %v765_v53, %v615_v58  ;;  %v775_v62 = vadd.f32 %v767_v60, %v617_v50 }
 0x3b9   :  { %v1643_v17 = vmul.f32 -1.442695, %v772_v45 }
 0x3ba   :  { %v1644_v4 = vmul.f32 -1.442695, %v773_v10  ;;  %v1645_v5 = vmul.f32 -1.442695, %v775_v62 }
 0x3bb   :  { %2162 = vpow2.f32 %v1643_v17 }
 0x3bc   :  { %2164 = vpow2.f32 %v1644_v4 }
 0x3bd   :  { %2166 = vpow2.f32 %v1645_v5  ;;  %v2862_v5 = vld [vmem:[#allocation8_spill] sm:$0xff] }
 0x3be   :  { %2168 = vtanh.f32 %v774_v1  ;;  %v2861_v1 = vld [vmem:[#allocation15_spill] sm:$0xff] }
 0x3bf   :  { %v817_v10 = vmul.f32 %v2861_v1, %v2437_v2  ;;  %v819_v62 = vmul.f32 %v2861_v1, %v2454_v36 }
 0x3c5   :  { %v2163_v25 = vpop.eup %2162 }
 0x3c6   :  { %v2165_v14 = vpop.eup %2164  ;;  %v779_v20 = vadd.f32 1.0, %v2163_v25  ;;  %v818_v25 = vmul.f32 %v2861_v1, %v2862_v5 }
 0x3c7   :  { %v785_v44 = vadd.f32 1.0, %v2165_v14  ;;  %v2167_v18 = vpop.eup %2166  ;;  %v2863_v14 = vld [vmem:[#allocation10_spill] sm:$0xff] }
 0x3c8   :  { %2170 = vrcp.f32 %v779_v20  ;;  %v2169_v24 = vpop.eup %2168  ;;  %v792_v6 = vadd.f32 1.0, %v2167_v18  ;;  %v820_v20 = vmul.f32 %v2861_v1, %v2863_v14 }
 0x3c9   :  { %2172 = vrcp.f32 %v785_v44 }
 0x3ca   :  { %2174 = vrcp.f32 %v792_v6 }
 0x3d2   :  { %v2171_v38 = vpop.eup %2170 }
 0x3d3   :  { %v2173_v30 = vpop.eup %2172  ;;  %v799_v37 = vmul.f32 %v2171_v38, %v2169_v24  ;;  %v821_v38 = vadd.f32 %v817_v10, %v2859_v9 }
 0x3d4   :  { %v798_v32 = vmul.f32 %v2173_v30, %v796_v61  ;;  %v2175_v4 = vpop.eup %2174  ;;  %v2864_v30 = vld [vmem:[#allocation12_spill] sm:$0xff] }
 0x3d6   :  { %v2642_v17 = vadd.f32 %v799_v37, %v798_v32  ;;  %v823_v37 = vadd.f32 %v819_v62, %v2864_v30 }
 0x3d8   :  { %2176 = vtanh.f32 %v2642_v17 }
 0x3e2   :  { %v2177_v58 = vpop.eup %2176 }
 0x3e3   :  { %v802_v53 = vmul.f32 %v2177_v58, %v2175_v4  ;;  %v822_v58 = vadd.f32 %v818_v25, %v2443_v8 }
 0x3e5   :  { %v826_v50 = vrot.slane %v802_v53, 2  ;;  %v803_v44 = vmul.f32 %v802_v53, %v2464_v22 }
 0x3e7   :  { %893 = vmatmul.mubr.f32.vlgmr.msra.gmra.mrb[6].mxu0 %v826_v50  ;;  %964 = vmatmul.mubr.f32.vlgmr.msra.gmra.mrb[6].mxu1 %v826_v50  ;;  %v805_v49 = vsel %vm804_vm6, %v803_v44, 0.0  ;;  %v824_v50 = vadd.f32 %v820_v20, %v2452_v33 }
 0x3e8   :  { %806 = vadd.xlane.f32.xlu1 %v805_v49  ;;  %1917 = vmatpush1.bf16.msra.mxu0 %v2341_v16 }
 0x3e9   :  { %1949 = vmatpush1.bf16.msra.mxu1 %v2344_v19  ;;  %1919 = vmatprep.subr.bf16.mxu0 %v2349_v23 }
 0x3ea   :  { %1951 = vmatprep.subr.bf16.mxu1 %v2351_v27  ;;  %1100 = vmatprep.mubr.f32.mxu0 %v2856_v57 }
 0x3eb   :  { %1171 = vmatprep.mubr.f32.mxu1 %v2856_v57 }
 0x3ec   :  { %1921 = vmatpush1.bf16.msra.mxu0 %v2353_v28 }
 0x3ed   :  { %1953 = vmatpush1.bf16.msra.mxu1 %v2356_v31  ;;  %1923 = vmatprep.subr.bf16.mxu0 %v2361_v35 }
 0x3ee   :  { %1955 = vmatprep.subr.bf16.mxu1 %v2363_v39 }
 0x3f0   :  { %1925 = vmatpush1.bf16.msra.mxu0 %v2365_v40 }
 0x3f1   :  { %1957 = vmatpush1.bf16.msra.mxu1 %v2368_v43  ;;  %1927 = vmatprep.subr.bf16.mxu0 %v2373_v47 }
 0x3f2   :  { %1959 = vmatprep.subr.bf16.mxu1 %v2375_v51 }
 0x3f4   :  { %1929 = vmatpush1.bf16.msra.mxu0 %v2377_v52 }
 0x3f5   :  { %1961 = vmatpush1.bf16.msra.mxu1 %v2380_v55  ;;  %1931 = vmatprep.subr.bf16.mxu0 %v2385_v59 }
 0x3f6   :  { %1963 = vmatprep.subr.bf16.mxu1 %v2387_v63 }
 0x3f8   :  { %1933 = vmatpush1.bf16.msra.mxu0 %v2389_v0 }
 0x3f9   :  { %1965 = vmatpush1.bf16.msra.mxu1 %v2392_v3  ;;  %1935 = vmatprep.subr.bf16.mxu0 %v2396_v7 }
 0x3fa   :  { %1967 = vmatprep.subr.bf16.mxu1 %v2399_v12 }
 0x3fc   :  { %1937 = vmatpush1.bf16.msra.mxu0 %v2401_v13 }
 0x3fd   :  { %1969 = vmatpush1.bf16.msra.mxu1 %v2405_v21  ;;  %1939 = vmatprep.subr.bf16.mxu0 %v2409_v26 }
 0x3fe   :  { %1971 = vmatprep.subr.bf16.mxu1 %v2411_v29 }
 0x400   :  { %1941 = vmatpush1.bf16.msra.mxu0 %v2414_v34 }
 0x401   :  { %1973 = vmatpush1.bf16.msra.mxu1 %v2418_v41  ;;  %1943 = vmatprep.subr.bf16.mxu0 %v2420_v42 }
 0x402   :  { %1975 = vmatprep.subr.bf16.mxu1 %v2423_v48 }
 0x404   :  { %1945 = vmatpush1.bf16.msra.mxu0 %v2426_v54 }
 0x405   :  { %1977 = vmatpush1.bf16.msra.mxu1 %v2430_v56  ;;  %1979 = vmatprep.subr.bf16.mxu0 %v2337_v11 }
 0x406   :  { %2011 = vmatprep.subr.bf16.mxu1 %v2339_v15 }
 0x475   :  { %v807_v60 = vpop.xlane.xlu1 %806 }
 0x476   :  { %v808_v45 = vadd.f32 %v807_v60, %v2508_v46 }
 0x478   :  { %810 = vst.msk [vmem:[%s2832_s2 + $0x4] sm:$0xc] %vm809_vm7, %v808_v45 }
 0x4ba   :  { %v894_v18 = vpop.f32.mrb[6].mxu0  ;;  %v965_v24 = vpop.f32.mrb[6].mxu1 }
 0x4bb   :  { %v974_v61 = vrot.slane %v894_v18, 4  ;;  %v976_v6 = vrot.slane %v965_v24, 4  ;;  %v896_v32 = vpop.f32.mrb[7].mxu0  ;;  %v967_v4 = vpop.f32.mrb[7].mxu1 }
 0x4bc   :  { %v975_v53 = vrot.slane %v896_v32, 4  ;;  %v977_v44 = vrot.slane %v967_v4, 4 }
 0x4bd   :  { %v982_v49 = vadd.f32 %v974_v61, %v821_v38  ;;  %v984_v60 = vadd.f32 %v976_v6, %v823_v37  ;;  %v1006_v38 = vrot.slane %v2642_v17, 6 }
 0x4be   :  { %v983_v45 = vadd.f32 %v975_v53, %v822_v58  ;;  %v985_v1 = vadd.f32 %v977_v44, %v824_v50 }
 0x4bf   :  { %v1646_v36 = vmul.f32 -1.442695, %v982_v49 }
 0x4c0   :  { %v1647_v14 = vmul.f32 -1.442695, %v983_v45  ;;  %v1648_v10 = vmul.f32 -1.442695, %v985_v1 }
 0x4c1   :  { %2178 = vpow2.f32 %v1646_v36 }
 0x4c2   :  { %2180 = vpow2.f32 %v1647_v14 }
 0x4c3   :  { %2182 = vpow2.f32 %v1648_v10 }
 0x4c4   :  { %2184 = vtanh.f32 %v984_v60  ;;  %v2865_v60 = vld [vmem:[#allocation14_spill] sm:$0xff] }
 0x4c5   :  { %v1025_v45 = vmul.f32 %v2865_v60, %v2437_v2  ;;  %v1026_v1 = vmul.f32 %v2865_v60, %v2862_v5 }
 0x4cb   :  { %v2179_v18 = vpop.eup %2178 }
 0x4cc   :  { %v2181_v62 = vpop.eup %2180  ;;  %v989_v24 = vadd.f32 1.0, %v2179_v18 }
 0x4cd   :  { %v995_v30 = vadd.f32 1.0, %v2181_v62  ;;  %v2183_v25 = vpop.eup %2182 }
 0x4ce   :  { %2186 = vrcp.f32 %v989_v24  ;;  %v2185_v20 = vpop.eup %2184  ;;  %v1002_v6 = vadd.f32 1.0, %v2183_v25  ;;  %v1030_v25 = vadd.f32 %v1026_v1, %v2443_v8 }
 0x4cf   :  { %2188 = vrcp.f32 %v995_v30 }
 0x4d0   :  { %2190 = vrcp.f32 %v1002_v6 }
 0x4d8   :  { %v2187_v32 = vpop.eup %2186 }
 0x4d9   :  { %v2189_v61 = vpop.eup %2188  ;;  %v1009_v37 = vmul.f32 %v2187_v32, %v2185_v20 }
 0x4da   :  { %v1008_v4 = vmul.f32 %v2189_v61, %v1006_v38  ;;  %v2191_v14 = vpop.eup %2190  ;;  %v2866_v38 = vld [vmem:[#allocation10_spill] sm:$0xff] }
 0x4db   :  { %v1028_v61 = vmul.f32 %v2865_v60, %v2866_v38 }
 0x4dc   :  { %v2699_v36 = vadd.f32 %v1009_v37, %v1008_v4 }
 0x4de   :  { %2192 = vtanh.f32 %v2699_v36 }
 0x4e8   :  { %v2193_v58 = vpop.eup %2192 }
 0x4e9   :  { %v1012_v53 = vmul.f32 %v2193_v58, %v2191_v14  ;;  %v1032_v58 = vadd.f32 %v1028_v61, %v2452_v33 }
 0x4eb   :  { %v1034_v50 = vrot.slane %v1012_v53, 4  ;;  %v1013_v30 = vmul.f32 %v1012_v53, %v2464_v22  ;;  %v2867_v53 = vld [vmem:[#allocation11_spill] sm:$0xff] }
 0x4ed   :  { %1101 = vmatmul.mubr.f32.vlgmr.msra.gmra.mrb[8].mxu0 %v1034_v50  ;;  %1172 = vmatmul.mubr.f32.vlgmr.msra.gmra.mrb[8].mxu1 %v1034_v50  ;;  %v1014_v44 = vsel %vm189_vm0, %v1013_v30, 0.0  ;;  %v1027_v50 = vmul.f32 %v2865_v60, %v2867_v53 }
 0x4ee   :  { %1015 = vadd.xlane.f32.xlu0 %v1014_v44  ;;  %1981 = vmatpush1.bf16.msra.mxu0 %v2341_v16 }
 0x4ef   :  { %2013 = vmatpush1.bf16.msra.mxu1 %v2344_v19  ;;  %1983 = vmatprep.subr.bf16.mxu0 %v2349_v23 }
 0x4f0   :  { %2015 = vmatprep.subr.bf16.mxu1 %v2351_v27  ;;  %1308 = vmatprep.mubr.f32.mxu0 %v2856_v57 }
 0x4f1   :  { %1379 = vmatprep.mubr.f32.mxu1 %v2856_v57 }
 0x4f2   :  { %1985 = vmatpush1.bf16.msra.mxu0 %v2353_v28 }
 0x4f3   :  { %2017 = vmatpush1.bf16.msra.mxu1 %v2356_v31  ;;  %1987 = vmatprep.subr.bf16.mxu0 %v2361_v35 }
 0x4f4   :  { %2019 = vmatprep.subr.bf16.mxu1 %v2363_v39 }
 0x4f6   :  { %1989 = vmatpush1.bf16.msra.mxu0 %v2365_v40 }
 0x4f7   :  { %2021 = vmatpush1.bf16.msra.mxu1 %v2368_v43  ;;  %1991 = vmatprep.subr.bf16.mxu0 %v2373_v47 }
 0x4f8   :  { %2023 = vmatprep.subr.bf16.mxu1 %v2375_v51 }
 0x4fa   :  { %1993 = vmatpush1.bf16.msra.mxu0 %v2377_v52 }
 0x4fb   :  { %2025 = vmatpush1.bf16.msra.mxu1 %v2380_v55  ;;  %1995 = vmatprep.subr.bf16.mxu0 %v2385_v59 }
 0x4fc   :  { %2027 = vmatprep.subr.bf16.mxu1 %v2387_v63 }
 0x4fe   :  { %1997 = vmatpush1.bf16.msra.mxu0 %v2389_v0 }
 0x4ff   :  { %2029 = vmatpush1.bf16.msra.mxu1 %v2392_v3  ;;  %1999 = vmatprep.subr.bf16.mxu0 %v2396_v7 }
 0x500   :  { %2031 = vmatprep.subr.bf16.mxu1 %v2399_v12 }
 0x502   :  { %2001 = vmatpush1.bf16.msra.mxu0 %v2401_v13 }
 0x503   :  { %2033 = vmatpush1.bf16.msra.mxu1 %v2405_v21  ;;  %2003 = vmatprep.subr.bf16.mxu0 %v2409_v26 }
 0x504   :  { %2035 = vmatprep.subr.bf16.mxu1 %v2411_v29 }
 0x506   :  { %2005 = vmatpush1.bf16.msra.mxu0 %v2414_v34 }
 0x507   :  { %2037 = vmatpush1.bf16.msra.mxu1 %v2418_v41  ;;  %2007 = vmatprep.subr.bf16.mxu0 %v2420_v42 }
 0x508   :  { %2039 = vmatprep.subr.bf16.mxu1 %v2423_v48 }
 0x50a   :  { %2009 = vmatpush1.bf16.msra.mxu0 %v2426_v54 }
 0x50b   :  { %2041 = vmatpush1.bf16.msra.mxu1 %v2430_v56  ;;  %2043 = vmatprep.subr.bf16.mxu0 %v2337_v11  ;;  %v1029_v11 = vadd.f32 %v1025_v45, %v2859_v9 }
 0x50c   :  { %2075 = vmatprep.subr.bf16.mxu1 %v2339_v15 }
 0x57b   :  { %v1016_v17 = vpop.xlane.xlu0 %1015 }
 0x57c   :  { %v1017_v49 = vadd.f32 %v1016_v17, %v2508_v46  ;;  %v2868_v17 = vld [vmem:[#allocation12_spill] sm:$0xff] }
 0x57e   :  { %1018 = vst.msk [vmem:[%s2832_s2 + $0x4] sm:$0x30] %vm194_vm1, %v1017_v49  ;;  %v1031_v49 = vadd.f32 %v1027_v50, %v2868_v17 }
 0x5c0   :  { %v1102_v10 = vpop.f32.mrb[8].mxu0  ;;  %v1173_v18 = vpop.f32.mrb[8].mxu1 }
 0x5c1   :  { %v1182_v62 = vrot.slane %v1102_v10, 2  ;;  %v1104_v15 = vpop.f32.mrb[9].mxu0  ;;  %v1175_v24 = vpop.f32.mrb[9].mxu1  ;;  %v1184_v44 = vrot.slane %v1173_v18, 2 }
 0x5c2   :  { %v1183_v20 = vrot.slane %v1104_v15, 2  ;;  %v1185_v14 = vrot.slane %v1175_v24, 2 }
 0x5c3   :  { %v1190_v32 = vadd.f32 %v1182_v62, %v1029_v11  ;;  %v1192_v1 = vadd.f32 %v1184_v44, %v1031_v49 }
 0x5c4   :  { %v1191_v37 = vadd.f32 %v1183_v20, %v1030_v25  ;;  %v1193_v30 = vadd.f32 %v1185_v14, %v1032_v58 }
 0x5c5   :  { %v1649_v6 = vmul.f32 -1.442695, %v1190_v32  ;;  %v1214_v32 = vrot.slane %v2699_v36, 6 }
 0x5c6   :  { %v1650_v4 = vmul.f32 -1.442695, %v1191_v37  ;;  %v1651_v45 = vmul.f32 -1.442695, %v1193_v30 }
 0x5c7   :  { %2194 = vpow2.f32 %v1649_v6 }
 0x5c8   :  { %2196 = vpow2.f32 %v1650_v4 }
 0x5c9   :  { %2198 = vpow2.f32 %v1651_v45 }
 0x5ca   :  { %2200 = vtanh.f32 %v1192_v1 }
 0x5d1   :  { %v2195_v10 = vpop.eup %2194 }
 0x5d2   :  { %v2197_v11 = vpop.eup %2196  ;;  %v1197_v62 = vadd.f32 1.0, %v2195_v10 }
 0x5d3   :  { %v1203_v15 = vadd.f32 1.0, %v2197_v11  ;;  %v2199_v24 = vpop.eup %2198 }
 0x5d4   :  { %2202 = vrcp.f32 %v1197_v62  ;;  %v2201_v25 = vpop.eup %2200  ;;  %v1210_v18 = vadd.f32 1.0, %v2199_v24 }
 0x5d5   :  { %2204 = vrcp.f32 %v1203_v15  ;;  %v2242_v15 = vld [vmem:[#allocation2 + $0x2] ss:$0 sm:$0xff] }
 0x5d6   :  { %2206 = vrcp.f32 %v1210_v18 }
 0x5de   :  { %v2203_v20 = vpop.eup %2202 }
 0x5df   :  { %v2205_v60 = vpop.eup %2204  ;;  %v1217_v61 = vmul.f32 %v2203_v20, %v2201_v25 }
 0x5e0   :  { %v1216_v37 = vmul.f32 %v2205_v60, %v1214_v32  ;;  %v2207_v4 = vpop.eup %2206 }
 0x5e2   :  { %v2756_v6 = vadd.f32 %v1217_v61, %v1216_v37 }
 0x5e4   :  { %2208 = vtanh.f32 %v2756_v6 }
 0x5ee   :  { %v2209_v14 = vpop.eup %2208 }
 0x5ef   :  { %v1220_v58 = vmul.f32 %v2209_v14, %v2207_v4 }
 0x5f1   :  { %v1242_v50 = vrot.slane %v1220_v58, 6  ;;  %v1221_v30 = vmul.f32 %v1220_v58, %v2464_v22  ;;  %v1410_v22 = vrot.slane %v2756_v6, 6 }
 0x5f3   :  { %1309 = vmatmul.mubr.f32.vlgmr.msra.gmra.mrb[10].mxu0 %v1242_v50  ;;  %1380 = vmatmul.mubr.f32.vlgmr.msra.gmra.mrb[10].mxu1 %v1242_v50  ;;  %v1222_v44 = vsel %vm399_vm2, %v1221_v30, 0.0 }
 0x5f4   :  { %1223 = vadd.xlane.f32.xlu1 %v1222_v44  ;;  %2045 = vmatpush1.bf16.msra.mxu0 %v2341_v16  ;;  %v1423_v16 = vld [vmem:[#allocation2 + $0x40] sm:$0xc] }
 0x5f5   :  { %2077 = vmatpush1.bf16.msra.mxu1 %v2344_v19  ;;  %2047 = vmatprep.subr.bf16.mxu0 %v2349_v23 }
 0x5f6   :  { %2079 = vmatprep.subr.bf16.mxu1 %v2351_v27  ;;  %1501 = vmatprep.mubr.f32.mxu0 %v2856_v57  ;;  %v2869_v27 = vld [vmem:[#allocation16_spill] sm:$0xff] }
 0x5f7   :  { %1572 = vmatprep.mubr.f32.mxu1 %v2856_v57 }
 0x5f8   :  { %2049 = vmatpush1.bf16.msra.mxu0 %v2353_v28  ;;  %v1233_v28 = vmul.f32 %v2869_v27, %v2437_v2 }
 0x5f9   :  { %2081 = vmatpush1.bf16.msra.mxu1 %v2356_v31  ;;  %2051 = vmatprep.subr.bf16.mxu0 %v2361_v35  ;;  %v1234_v31 = vmul.f32 %v2869_v27, %v2862_v5 }
 0x5fa   :  { %2083 = vmatprep.subr.bf16.mxu1 %v2363_v39  ;;  %v1237_v35 = vadd.f32 %v1233_v28, %v2859_v9 }
 0x5fc   :  { %2053 = vmatpush1.bf16.msra.mxu0 %v2365_v40 }
 0x5fd   :  { %2085 = vmatpush1.bf16.msra.mxu1 %v2368_v43  ;;  %2055 = vmatprep.subr.bf16.mxu0 %v2373_v47  ;;  %v1238_v43 = vadd.f32 %v1234_v31, %v2443_v8 }
 0x5fe   :  { %2087 = vmatprep.subr.bf16.mxu1 %v2375_v51 }
 0x600   :  { %2057 = vmatpush1.bf16.msra.mxu0 %v2377_v52 }
 0x601   :  { %2089 = vmatpush1.bf16.msra.mxu1 %v2380_v55  ;;  %2059 = vmatprep.subr.bf16.mxu0 %v2385_v59  ;;  %v1236_v59 = vmul.f32 %v2869_v27, %v2866_v38 }
 0x602   :  { %2091 = vmatprep.subr.bf16.mxu1 %v2387_v63 }
 0x604   :  { %2061 = vmatpush1.bf16.msra.mxu0 %v2389_v0 }
 0x605   :  { %1426 = vperm.xlu1 %2113, %v1423_v16   ;;  %2093 = vmatpush1.bf16.msra.mxu1 %v2392_v3  ;;  %v1240_v3 = vadd.f32 %v1236_v59, %v2452_v33 }
 0x606   :  { %2063 = vmatprep.subr.bf16.mxu0 %v2396_v7  ;;  %2095 = vmatprep.subr.bf16.mxu1 %v2399_v12  ;;  %v1235_v7 = vmul.f32 %v2869_v27, %v2867_v53 }
 0x608   :  { %2065 = vmatpush1.bf16.msra.mxu0 %v2401_v13  ;;  %v1239_v13 = vadd.f32 %v1235_v7, %v2868_v17 }
 0x609   :  { %2097 = vmatpush1.bf16.msra.mxu1 %v2405_v21  ;;  %2067 = vmatprep.subr.bf16.mxu0 %v2409_v26 }
 0x60a   :  { %2099 = vmatprep.subr.bf16.mxu1 %v2411_v29 }
 0x60c   :  { %2069 = vmatpush1.bf16.msra.mxu0 %v2414_v34 }
 0x60d   :  { %2101 = vmatpush1.bf16.msra.mxu1 %v2418_v41  ;;  %2071 = vmatprep.subr.bf16.mxu0 %v2420_v42 }
 0x60e   :  { %2103 = vmatprep.subr.bf16.mxu1 %v2423_v48 }
 0x610   :  { %2073 = vmatpush1.bf16.msra.mxu0 %v2426_v54 }
 0x611   :  { %2105 = vmatpush1.bf16.msra.mxu1 %v2430_v56 }
 0x681   :  { %v1224_v19 = vpop.xlane.xlu1 %1223 }
 0x682   :  { %v1225_v23 = vadd.f32 %v1224_v19, %v2508_v46 }
 0x684   :  { %1226 = vst.msk [vmem:[%s2832_s2 + $0x4] sm:$0xc0] %vm404_vm3, %v1225_v23 }
 0x685   :  { %v1427_v60 = vpop.permute.xlu1 %1426 }
 0x686   :  { %v1429_v61 = vmul.f32 %v1427_v60, %v2437_v2  ;;  %v1430_v18 = vmul.f32 %v1427_v60, %v2862_v5  ;;  %v1432_v16 = vmul.f32 %v1427_v60, %v2866_v38  ;;  %v1431_v5 = vmul.f32 %v1427_v60, %v2867_v53 }
 0x688   :  { %v1433_v4 = vadd.f32 %v1429_v61, %v2859_v9  ;;  %v1434_v30 = vadd.f32 %v1430_v18, %v2443_v8  ;;  %v1436_v2 = vadd.f32 %v1432_v16, %v2452_v33 }
 0x6c6   :  { %v1310_v39 = vpop.f32.mrb[10].mxu0  ;;  %v1381_v40 = vpop.f32.mrb[10].mxu1 }
 0x6c7   :  { %v1386_v47 = vadd.f32 %v1310_v39, %v1237_v35  ;;  %v1312_v51 = vpop.f32.mrb[11].mxu0  ;;  %v1383_v52 = vpop.f32.mrb[11].mxu1  ;;  %v1388_v26 = vadd.f32 %v1381_v40, %v1239_v13  ;;  %v1435_v35 = vadd.f32 %v1431_v5, %v2868_v17 }
 0x6c8   :  { %v1387_v55 = vadd.f32 %v1312_v51, %v1238_v43  ;;  %v1389_v12 = vadd.f32 %v1383_v52, %v1240_v3 }
 0x6c9   :  { %v1652_v63 = vmul.f32 -1.442695, %v1386_v47 }
 0x6ca   :  { %v1653_v0 = vmul.f32 -1.442695, %v1387_v55  ;;  %v1654_v21 = vmul.f32 -1.442695, %v1389_v12 }
 0x6cb   :  { %2210 = vpow2.f32 %v1652_v63 }
 0x6cc   :  { %2212 = vpow2.f32 %v1653_v0 }
 0x6cd   :  { %2214 = vpow2.f32 %v1654_v21 }
 0x6ce   :  { %2216 = vtanh.f32 %v1388_v26 }
 0x6d5   :  { %v2211_v29 = vpop.eup %2210 }
 0x6d6   :  { %v2213_v34 = vpop.eup %2212  ;;  %v1393_v41 = vadd.f32 1.0, %v2211_v29  ;;  %v2243_v29 = vld [vmem:[#allocation2 + $0x3] ss:$0 sm:$0xff] }
 0x6d7   :  { %v1399_v42 = vadd.f32 1.0, %v2213_v34  ;;  %v2215_v48 = vpop.eup %2214 }
 0x6d8   :  { %2218 = vrcp.f32 %v1393_v41  ;;  %v2217_v54 = vpop.eup %2216  ;;  %v1406_v49 = vadd.f32 1.0, %v2215_v48 }
 0x6d9   :  { %2220 = vrcp.f32 %v1399_v42 }
 0x6da   :  { %2222 = vrcp.f32 %v1406_v49 }
 0x6e2   :  { %v2219_v56 = vpop.eup %2218 }
 0x6e3   :  { %v2221_v57 = vpop.eup %2220  ;;  %v1413_v36 = vmul.f32 %v2219_v56, %v2217_v54 }
 0x6e4   :  { %v1412_v45 = vmul.f32 %v2221_v57, %v1410_v22  ;;  %v2223_v10 = vpop.eup %2222 }
 0x6e6   :  { %v1414_v1 = vadd.f32 %v1413_v36, %v1412_v45 }
 0x6e8   :  { %2224 = vtanh.f32 %v1414_v1  ;;  %v1615_v33 = vrot.slane %v1414_v1, 6 }
 0x6f2   :  { %v2225_v11 = vpop.eup %2224 }
 0x6f3   :  { %v1416_v62 = vmul.f32 %v2225_v11, %v2223_v10 }
 0x6f5   :  { %1502 = vmatmul.mubr.f32.vlgmr.msra.gmra.mrb[12].mxu0 %v1416_v62  ;;  %1573 = vmatmul.mubr.f32.vlgmr.msra.gmra.mrb[12].mxu1 %v1416_v62  ;;  %v1417_v24 = vmul.f32 %v2242_v15, %v1416_v62 }
 0x6f7   :  { %v1418_v25 = vsel %vm597_vm4, %v1417_v24, 0.0 }
 0x6f8   :  { %1419 = vadd.xlane.f32.xlu0 %v1418_v25 }
 0x785   :  { %v1420_v20 = vpop.xlane.xlu0 %1419 }
 0x786   :  { %v1421_v32 = vadd.f32 %v1420_v20, %v2508_v46 }
 0x788   :  { %1422 = vst.msk [vmem:[%s2832_s2 + $0xc] sm:$0x3] %vm602_vm5, %v1421_v32 }
 0x7c8   :  { %v1503_v37 = vpop.f32.mrb[12].mxu0  ;;  %v1574_v6 = vpop.f32.mrb[12].mxu1 }
 0x7c9   :  { %v1583_v14 = vrot.slane %v1503_v37, 6  ;;  %v1505_v58 = vpop.f32.mrb[13].mxu0  ;;  %v1576_v50 = vpop.f32.mrb[13].mxu1  ;;  %v1585_v31 = vrot.slane %v1574_v6, 6 }
 0x7ca   :  { %v1584_v46 = vrot.slane %v1505_v58, 6  ;;  %v1586_v28 = vrot.slane %v1576_v50, 6 }
 0x7cb   :  { %v1591_v44 = vadd.f32 %v1583_v14, %v1433_v4  ;;  %v1593_v8 = vadd.f32 %v1585_v31, %v1435_v35 }
 0x7cc   :  { %v1592_v19 = vadd.f32 %v1584_v46, %v1434_v30  ;;  %v1594_v9 = vadd.f32 %v1586_v28, %v1436_v2 }
 0x7cd   :  { %v1655_v23 = vmul.f32 -1.442695, %v1591_v44 }
 0x7ce   :  { %v1656_v27 = vmul.f32 -1.442695, %v1592_v19  ;;  %v1657_v39 = vmul.f32 -1.442695, %v1594_v9 }
 0x7cf   :  { %2226 = vpow2.f32 %v1655_v23 }
 0x7d0   :  { %2228 = vpow2.f32 %v1656_v27 }
 0x7d1   :  { %2230 = vpow2.f32 %v1657_v39 }
 0x7d2   :  { %2232 = vtanh.f32 %v1593_v8 }
 0x7d9   :  { %v2227_v40 = vpop.eup %2226 }
 0x7da   :  { %v2229_v43 = vpop.eup %2228  ;;  %v1598_v47 = vadd.f32 1.0, %v2227_v40 }
 0x7db   :  { %v1604_v38 = vadd.f32 1.0, %v2229_v43  ;;  %v2231_v51 = vpop.eup %2230 }
 0x7dc   :  { %2234 = vrcp.f32 %v1598_v47  ;;  %v2233_v52 = vpop.eup %2232  ;;  %v1611_v63 = vadd.f32 1.0, %v2231_v51 }
 0x7dd   :  { %2236 = vrcp.f32 %v1604_v38 }
 0x7de   :  { %2238 = vrcp.f32 %v1611_v63 }
 0x7e6   :  { %v2235_v55 = vpop.eup %2234 }
 0x7e7   :  { %v2237_v59 = vpop.eup %2236  ;;  %v1618_v53 = vmul.f32 %v2235_v55, %v2233_v52 }
 0x7e8   :  { %v1617_v0 = vmul.f32 %v2237_v59, %v1615_v33  ;;  %v2239_v17 = vpop.eup %2238 }
 0x7ea   :  { %v1619_v3 = vadd.f32 %v1618_v53, %v1617_v0 }
 0x7ec   :  { %2240 = vtanh.f32 %v1619_v3 }
 0x7f6   :  { %v2241_v7 = vpop.eup %2240 }
 0x7f7   :  { %v1621_v12 = vmul.f32 %v2241_v7, %v2239_v17 }
 0x7f9   :  { %v1622_v13 = vmul.f32 %v2242_v15, %v1621_v12 }
 0x7fb   :  { %v1623_v21 = vsel %vm804_vm6, %v1622_v13, 0.0 }
 0x7fc   :  { %1624 = vadd.xlane.f32.xlu0 %v1623_v21 }
 0x889   :  { %v1625_v26 = vpop.xlane.xlu0 %1624 }
 0x88a   :  { %v1626_v34 = vadd.f32 %v2243_v29, %v1625_v26 }
 0x88c   :  { %1627 = vst.msk [vmem:[%s2832_s2 + $0xc] sm:$0xc] %vm809_vm7, %v1626_v34 }
 0x88d   :  { %1632 = vsyncpa [#allocation3], 1 }
 0x88e   :  { %1633 = vsyncpa [#allocation5], 1 }

</bundles_post_ra>
